<compile_context>
chip_gen: v5e
topology: v5e:2x2
jax: 0.10.0
libtpu: 0.0.40
codegen_flags: <defaults>
</compile_context>

<pallas_src>
import functools

import jax
import jax.numpy as jnp
from jax import lax
from jax.experimental import pallas as pl
from jax.experimental.pallas import tpu as pltpu


# ----------------------------------------------------------------------------
# Pallas kernel: fused Bottleneck forward for B_blk images per grid step.
# ----------------------------------------------------------------------------
def _bottleneck_kernel(x_ref, w1_ref, s1_ref, b1_ref, w2_ref, s2_ref, b2_ref,
                       w3_ref, s3_ref, b3_ref, o_ref, *scratch,
                       stride, B, H, W, Cin, mid, Cout):
    if stride == 1:
        (pad_ref,) = scratch
        padx_ref = None
    else:
        pad_ref, padx_ref = scratch

    Ho = (H - 1) // stride + 1
    Wo = (W - 1) // stride + 1
    M_in = B * H * W
    M_out = B * Ho * Wo

    x = x_ref[...]                                           # (B, H, W, Cin) bf16

    # --- conv1 (grouped 1x1 folded to dense block-diag; channel shuffle folded
    #     into its output columns) + BN1 + ReLU.  bf16 inputs, f32 accumulate.
    h1 = jnp.dot(x.reshape(M_in, Cin), w1_ref[...],
                 preferred_element_type=jnp.float32)         # (M_in, mid) f32
    h1 = jnp.maximum(h1 * s1_ref[...] + b1_ref[...], 0.0)

    # --- conv2: 3x3 depthwise, padding=1, stride=stride + BN2 + ReLU.
    # Zero only the 1-element border every step (cheap; interior overwritten).
    # Not gated on program_id==0: with "parallel" semantics the grid can be
    # split across v7x's two TensorCores, each with private scratch.
    zrow = jnp.zeros((B, 1, W + 2, mid), jnp.float32)
    zcol = jnp.zeros((B, H + 2, 1, mid), jnp.float32)
    pad_ref[:, 0:1, :, :] = zrow
    pad_ref[:, H + 1:H + 2, :, :] = zrow
    pad_ref[:, :, 0:1, :] = zcol
    pad_ref[:, :, W + 1:W + 2, :] = zcol
    pad_ref[:, 1:H + 1, 1:W + 1, :] = h1.reshape(B, H, W, mid)

    w2 = w2_ref[...]                                         # (9, mid), loaded once
    acc = jnp.zeros((B, Ho, Wo, mid), jnp.float32)
    if stride == 1:
        # One VMEM load per ky (3 total instead of 9); the kx shifts are
        # in-register static slices (XLU shift) of the already-loaded band.
        for ky in range(3):
            band = pad_ref[:, ky:ky + H, :, :]               # (B, H, W+2, mid)
            for kx in range(3):
                acc = acc + band[:, :, kx:kx + W, :] * w2[ky * 3 + kx]
    else:
        # TODO(synk): de-interleave even/odd W columns so these strided sublane
        # reads become contiguous slices.
        for ky in range(3):
            for kx in range(3):
                win = pad_ref[:, pl.ds(ky, Ho, stride), pl.ds(kx, Wo, stride), :]
                acc = acc + win * w2[ky * 3 + kx]
    h2 = jnp.maximum(acc.reshape(M_out, mid) * s2_ref[...] + b2_ref[...], 0.0)

    # --- conv3 (grouped 1x1 folded to dense block-diag) + BN3 (ReLU after merge)
    h3 = jnp.dot(h2.astype(jnp.bfloat16), w3_ref[...],
                 preferred_element_type=jnp.float32)         # (M_out, Cout) f32
    h3 = (h3 * s3_ref[...] + b3_ref[...]).reshape(B, Ho, Wo, Cout)

    if stride == 1:
        # identity shortcut: add the bf16 x directly (implicit f32 promote,
        # no materialized f32 copy of the input block), then ReLU, bf16 store.
        o_ref[...] = jnp.maximum(h3 + x, 0.0).astype(jnp.bfloat16)
    else:
        # shortcut = AvgPool2d(3, stride=2, padding=1), count_include_pad=True
        zrx = jnp.zeros((B, 1, W + 2, Cin), jnp.float32)
        zcx = jnp.zeros((B, H + 2, 1, Cin), jnp.float32)
        padx_ref[:, 0:1, :, :] = zrx
        padx_ref[:, H + 1:H + 2, :, :] = zrx
        padx_ref[:, :, 0:1, :] = zcx
        padx_ref[:, :, W + 1:W + 2, :] = zcx
        padx_ref[:, 1:H + 1, 1:W + 1, :] = x.astype(jnp.float32)
        # TODO(synk): make the pool separable (3-tap row sum, then 3-tap
        # strided column sum) to cut the 9 loads to 6.
        pooled = jnp.zeros((B, Ho, Wo, Cin), jnp.float32)
        for ky in range(3):
            for kx in range(3):
                pooled = pooled + padx_ref[:, pl.ds(ky, Ho, stride),
                                           pl.ds(kx, Wo, stride), :]
        pooled = pooled * (1.0 / 9.0)
        # relu(cat(out, res)) == cat(relu(out), relu(res)); the concat happens
        # in-kernel via lane-slice stores into a single combined output, so the
        # wrapper needs no extra concat pass over the output tensor.
        o_ref[:, :, :, 0:Cout] = jnp.maximum(h3, 0.0).astype(jnp.bfloat16)
        o_ref[:, :, :, Cout:Cout + Cin] = jnp.maximum(pooled, 0.0).astype(jnp.bfloat16)


# ----------------------------------------------------------------------------
# Parameter folding (glue, plain JAX)
# ----------------------------------------------------------------------------
def _fold_bn(gamma, beta, mean, var, eps=1e-5):
    scale = gamma / jnp.sqrt(var + eps)
    return scale, beta - mean * scale


def _grouped_1x1_to_dense(w, cin, groups):
    """PyTorch grouped 1x1 conv weight (cout, cin//groups, 1, 1) -> dense
    block-diagonal (cin, cout) matrix for the row-major `x @ W` form."""
    cout = w.shape[0]
    cin_g, cout_g = cin // groups, cout // groups
    w2 = w[:, :, 0, 0]                                       # (cout, cin//groups)
    dense = jnp.zeros((cin, cout), jnp.float32)
    for gi in range(groups):
        blk = w2[gi * cout_g:(gi + 1) * cout_g, :]           # (cout_g, cin_g)
        dense = dense.at[gi * cin_g:(gi + 1) * cin_g,
                         gi * cout_g:(gi + 1) * cout_g].set(blk.T)
    return dense


# ----------------------------------------------------------------------------
# VMEM sizing / generation-aware budgeting
# ----------------------------------------------------------------------------
def _padded_bytes(shape, itemsize):
    """Rough VMEM footprint: pad lane dim to 128, sublane dim to the tile."""
    s = list(shape)
    if len(s) >= 1:
        s[-1] = -(-s[-1] // 128) * 128
    if len(s) >= 2:
        sub = 8 * max(1, 4 // itemsize)                      # 8 for f32, 16 for bf16
        s[-2] = -(-s[-2] // sub) * sub
    n = 1
    for d in s:
        n *= d
    return n * itemsize


def _block_vmem_bytes(B, H, W, Cin, mid, Cout, stride):
    Ho = (H - 1) // stride + 1
    Wo = (W - 1) // stride + 1
    Ctot = Cout + (Cin if stride == 2 else 0)
    total = 0
    # pipelined (double-buffered) blocks
    total += 2 * _padded_bytes((B, H, W, Cin), 2)            # x, bf16
    total += 2 * _padded_bytes((B, Ho, Wo, Ctot), 2)         # combined output, bf16
    # whole-kernel scratch (f32 staging)
    total += _padded_bytes((B, H + 2, W + 2, mid), 4)
    if stride == 2:
        total += _padded_bytes((B, H + 2, W + 2, Cin), 4)
    # folded weights / BN vectors (small)
    total += 2 * (_padded_bytes((Cin, mid), 2) + _padded_bytes((mid, Cout), 2)
                  + _padded_bytes((9, mid), 4) + 6 * _padded_bytes((1, Cout), 4))
    return total


def _vmem_capacity_bytes():
    """Per-core VMEM capacity; conservative 64 MiB (v7x) fallback."""
    try:
        info = pltpu.get_tpu_info()
        cap = getattr(info, "vmem_capacity_bytes", None)
        if cap:
            return int(cap)
    except Exception:
        pass
    return 64 << 20


def _choose_block_n(N, H, W, Cin, mid, Cout, stride, *, vmem_budget, target_rows,
                    prefer_even_grid=False):
    """Batch images per grid step so matmul M = B*H*W feeds the MXU well while
    staying under the generation-specific per-block VMEM budget."""
    divisors = [b for b in range(1, N + 1) if N % b == 0]
    fitting = [b for b in divisors
               if _block_vmem_bytes(b, H, W, Cin, mid, Cout, stride) <= vmem_budget]
    if not fitting:
        # TODO(synk): tile over output rows when even a single image exceeds
        # the per-block VMEM budget (very large H*W*C).
        return 1
    reaching = [b for b in fitting if b * H * W >= target_rows]
    cands = reaching if reaching else fitting
    pick = min if reaching else max   # smallest block that feeds the MXU, else biggest
    if prefer_even_grid:
        # v7x has 2 TensorCores; an even grid keeps both busy across all steps.
        even = [b for b in cands if (N // b) % 2 == 0]
        if even:
            return pick(even)
    return pick(cands)


# ----------------------------------------------------------------------------
# Wrapper
# ----------------------------------------------------------------------------
def bottleneck_forward(x_nchw, params, *, in_planes, out_planes, stride, groups,
                       block_n=None):
    """Pallas TPU implementation of ShuffleNet Bottleneck.forward (NCHW in/out)."""
    assert stride in (1, 2)
    mid = out_planes // 4
    g = 1 if in_planes == 24 else groups
    N, C, H, W = x_nchw.shape
    assert C == in_planes
    if stride == 1:
        assert in_planes == out_planes, "stride-1 branch adds the identity shortcut"

    s1, b1 = _fold_bn(params["gamma1"], params["beta1"], params["mean1"], params["var1"])
    s2, b2 = _fold_bn(params["gamma2"], params["beta2"], params["mean2"], params["var2"])
    s3, b3 = _fold_bn(params["gamma3"], params["beta3"], params["mean3"], params["var3"])

    # conv1 -> dense; fold channel-shuffle permutation into its output columns.
    w1d = _grouped_1x1_to_dense(params["w1"], in_planes, g)   # (Cin, mid)
    c = jnp.arange(mid)
    perm = (c % g) * (mid // g) + (c // g)                    # shuffle permutation
    w1d = w1d[:, perm].astype(jnp.bfloat16)
    s1, b1 = s1[perm], b1[perm]

    # conv2 depthwise -> 9 channel-last taps (kept f32 for the VPU path).
    w2f = jnp.transpose(params["w2"][:, 0, :, :], (1, 2, 0)).reshape(9, mid)

    # conv3 -> dense (bf16 MXU input).
    # TODO(synk): per-group matmuls on v5e at production channel counts.
    w3d = _grouped_1x1_to_dense(params["w3"], mid, groups).astype(jnp.bfloat16)

    s1 = s1.reshape(1, mid); b1 = b1.reshape(1, mid)
    s2 = s2.reshape(1, mid); b2 = b2.reshape(1, mid)
    s3 = s3.reshape(1, out_planes); b3 = b3.reshape(1, out_planes)

    x_nhwc = jnp.transpose(x_nchw, (0, 2, 3, 1)).astype(jnp.bfloat16)
    Ho = (H - 1) // stride + 1
    Wo = (W - 1) // stride + 1
    Ctot = out_planes + (in_planes if stride == 2 else 0)

    # Generation-aware VMEM budgets.
    cap = _vmem_capacity_bytes()
    if cap >= (96 << 20):      # v5e / v6e: 128 MiB physical VMEM
        budget, limit_cap, target_rows = 48 << 20, 96 << 20, 512
        prefer_even_grid = False
    else:                      # v7x: 64 MiB per TensorCore, 2 TCs
        budget, limit_cap, target_rows = 20 << 20, 48 << 20, 256
        prefer_even_grid = True

    B = block_n if block_n is not None else _choose_block_n(
        N, H, W, C, mid, out_planes, stride,
        vmem_budget=budget, target_rows=target_rows,
        prefer_even_grid=prefer_even_grid)
    assert N % B == 0, (N, B)
    grid = (N // B,)

    est = _block_vmem_bytes(B, H, W, C, mid, out_planes, stride)
    vmem_limit = int(max(32 << 20, min(limit_cap, 2 * est)))

    kernel = functools.partial(_bottleneck_kernel, stride=stride, B=B, H=H, W=W,
                               Cin=C, mid=mid, Cout=out_planes)

    def full(shape):
        return pl.BlockSpec(shape, lambda n: (0,) * len(shape))

    in_specs = [
        pl.BlockSpec((B, H, W, C), lambda n: (n, 0, 0, 0)),
        full((C, mid)), full((1, mid)), full((1, mid)),
        full((9, mid)), full((1, mid)), full((1, mid)),
        full((mid, out_planes)), full((1, out_planes)), full((1, out_planes)),
    ]

    out_shape = jax.ShapeDtypeStruct((N, Ho, Wo, Ctot), jnp.bfloat16)
    out_specs = pl.BlockSpec((B, Ho, Wo, Ctot), lambda n: (n, 0, 0, 0))

    scratch_shapes = [pltpu.VMEM((B, H + 2, W + 2, mid), jnp.float32)]
    if stride == 2:
        scratch_shapes.append(pltpu.VMEM((B, H + 2, W + 2, C), jnp.float32))

    out_nhwc = pl.pallas_call(
        kernel,
        out_shape=out_shape,
        grid_spec=pltpu.PrefetchScalarGridSpec(
            num_scalar_prefetch=0,
            grid=grid,
            in_specs=in_specs,
            out_specs=out_specs,
            scratch_shapes=scratch_shapes,
        ),
        compiler_params=pltpu.CompilerParams(
            dimension_semantics=("parallel",),
            vmem_limit_bytes=vmem_limit,
        ),
    )(x_nhwc, w1d, s1, b1, w2f, s2, b2, w3d, s3, b3)

    # NCHW + f32 to match the PyTorch module interface (kernel writeback is bf16).
    return jnp.transpose(out_nhwc, (0, 3, 1, 2)).astype(jnp.float32)


# ----------------------------------------------------------------------------
# Pure-JAX reference (mirrors the PyTorch forward, eval-mode BN, f32 HIGHEST)
# ----------------------------------------------------------------------------
def bottleneck_reference(x, p, *, in_planes, out_planes, stride, groups, eps=1e-5):
    mid = out_planes // 4
    g = 1 if in_planes == 24 else groups
    dn = ("NCHW", "OIHW", "NCHW")

    def bn(h, i):
        gm, bt = p[f"gamma{i}"], p[f"beta{i}"]
        mn, vr = p[f"mean{i}"], p[f"var{i}"]
        inv = gm / jnp.sqrt(vr + eps)
        return ((h - mn[None, :, None, None]) * inv[None, :, None, None]
                + bt[None, :, None, None])

    h = lax.conv_general_dilated(x, p["w1"], (1, 1), "VALID",
                                 dimension_numbers=dn, feature_group_count=g,
                                 precision=lax.Precision.HIGHEST)
    h = jax.nn.relu(bn(h, 1))
    N, C, H, W = h.shape
    h = h.reshape(N, g, C // g, H, W).transpose(0, 2, 1, 3, 4).reshape(N, C, H, W)
    h = lax.conv_general_dilated(h, p["w2"], (stride, stride), ((1, 1), (1, 1)),
                                 dimension_numbers=dn, feature_group_count=mid,
                                 precision=lax.Precision.HIGHEST)
    h = jax.nn.relu(bn(h, 2))
    h = lax.conv_general_dilated(h, p["w3"], (1, 1), "VALID",
                                 dimension_numbers=dn, feature_group_count=groups,
                                 precision=lax.Precision.HIGHEST)
    h = bn(h, 3)
    if stride == 2:
        pooled = lax.reduce_window(x, 0.0, lax.add, (1, 1, 3, 3), (1, 1, 2, 2),
                                   ((0, 0), (0, 0), (1, 1), (1, 1))) / 9.0
        out = jnp.concatenate([h, pooled], axis=1)
    else:
        out = h + x
    return jax.nn.relu(out)


# ----------------------------------------------------------------------------
# Deterministic parameter init (shapes from the module's __init__)
# ----------------------------------------------------------------------------
def init_params(key, in_planes, out_planes, groups):
    mid = out_planes // 4
    g = 1 if in_planes == 24 else groups
    ks = jax.random.split(key, 15)
    p = {
        "w1": 0.2 * jax.random.normal(ks[0], (mid, in_planes // g, 1, 1), jnp.float32),
        "w2": 0.2 * jax.random.normal(ks[1], (mid, 1, 3, 3), jnp.float32),
        "w3": 0.2 * jax.random.normal(ks[2], (out_planes, mid // groups, 1, 1), jnp.float32),
    }
    for i, c, o in ((1, mid, 3), (2, mid, 7), (3, out_planes, 11)):
        p[f"gamma{i}"] = jax.random.uniform(ks[o], (c,), jnp.float32, 0.5, 1.5)
        p[f"beta{i}"] = 0.1 * jax.random.normal(ks[o + 1], (c,), jnp.float32)
        p[f"mean{i}"] = 0.1 * jax.random.normal(ks[o + 2], (c,), jnp.float32)
        p[f"var{i}"] = jax.random.uniform(ks[o + 3], (c,), jnp.float32, 0.5, 1.5)
    return p


if __name__ == "__main__":
    root = jax.random.PRNGKey(0)

    def run_case(name, *, in_planes, out_planes, stride, groups, N, H, W, key,
                 block_n=None):
        kx, kp = jax.random.split(key)
        x = jax.random.normal(kx, (N, in_planes, H, W), jnp.float32)
        p = init_params(kp, in_planes, out_planes, groups)
        out = bottleneck_forward(x, p, in_planes=in_planes, out_planes=out_planes,
                                 stride=stride, groups=groups, block_n=block_n)
        out = jax.block_until_ready(out)
        ref = bottleneck_reference(x, p, in_planes=in_planes, out_planes=out_planes,
                                   stride=stride, groups=groups)
        assert out.shape == ref.shape, (name, out.shape, ref.shape)
        # bf16 MXU inputs, bf16 residual and bf16 output writeback vs a float32
        # HIGHEST-precision reference -> scale-aware tolerance.
        err = float(jnp.max(jnp.abs(out - ref)))
        tol = 5e-2 + 1e-2 * float(jnp.max(jnp.abs(ref)))
        assert err < tol, f"{name}: max abs err {err} (tol {tol})"

    k1, k2, k3 = jax.random.split(root, 3)
    # stride=1: identity shortcut + add; explicit block_n=2 exercises a
    # multi-step grid (border re-zero + batched matmul M dimension).
    run_case("stride1", in_planes=16, out_planes=16, stride=1, groups=2,
             N=4, H=8, W=8, key=k1, block_n=2)
    # stride=2: AvgPool shortcut + in-kernel channel concat (auto block_n).
    run_case("stride2", in_planes=16, out_planes=32, stride=2, groups=2,
             N=2, H=8, W=8, key=k2)
    # in_planes==24 special case (conv1 groups=1) with groups=3 in conv3.
    run_case("stride2_g1", in_planes=24, out_planes=48, stride=2, groups=3,
             N=2, H=8, W=8, key=k3)
    print("KERNEL_OK")
</pallas_src>

<mosaic_0001>
module attributes {stable_mosaic.version = 11 : i64} {
  func.func @_bottleneck_kernel(%arg0: i32, %arg1: memref<2x8x8x16xbf16, #tpu.memory_space<vmem>>, %arg2: memref<16x4xbf16, #tpu.memory_space<vmem>>, %arg3: memref<1x4xf32, #tpu.memory_space<vmem>>, %arg4: memref<1x4xf32, #tpu.memory_space<vmem>>, %arg5: memref<9x4xf32, #tpu.memory_space<vmem>>, %arg6: memref<1x4xf32, #tpu.memory_space<vmem>>, %arg7: memref<1x4xf32, #tpu.memory_space<vmem>>, %arg8: memref<4x16xbf16, #tpu.memory_space<vmem>>, %arg9: memref<1x16xf32, #tpu.memory_space<vmem>>, %arg10: memref<1x16xf32, #tpu.memory_space<vmem>>, %arg11: memref<2x8x8x16xbf16, #tpu.memory_space<vmem>>, %arg12: memref<2x10x10x4xf32, #tpu.memory_space<vmem>>) attributes {dimension_semantics = [#tpu.dimension_semantics<parallel>], iteration_bounds = array<i64: 2>, scalar_prefetch = 0 : i64, scratch_operands = 1 : i64, tpu.core_type = #tpu.core_type<tc>, window_params = [{transform_indices = @transform_0, window_bounds = array<i64: 2, 8, 8, 16>}, {pipeline_mode = #tpu.pipeline_mode<synchronous>, transform_indices = @transform_1, window_bounds = array<i64: 16, 4>}, {pipeline_mode = #tpu.pipeline_mode<synchronous>, transform_indices = @transform_2, window_bounds = array<i64: 1, 4>}, {pipeline_mode = #tpu.pipeline_mode<synchronous>, transform_indices = @transform_3, window_bounds = array<i64: 1, 4>}, {pipeline_mode = #tpu.pipeline_mode<synchronous>, transform_indices = @transform_4, window_bounds = array<i64: 9, 4>}, {pipeline_mode = #tpu.pipeline_mode<synchronous>, transform_indices = @transform_5, window_bounds = array<i64: 1, 4>}, {pipeline_mode = #tpu.pipeline_mode<synchronous>, transform_indices = @transform_6, window_bounds = array<i64: 1, 4>}, {pipeline_mode = #tpu.pipeline_mode<synchronous>, transform_indices = @transform_7, window_bounds = array<i64: 4, 16>}, {pipeline_mode = #tpu.pipeline_mode<synchronous>, transform_indices = @transform_8, window_bounds = array<i64: 1, 16>}, {pipeline_mode = #tpu.pipeline_mode<synchronous>, transform_indices = @transform_9, window_bounds = array<i64: 1, 16>}, {transform_indices = @transform_10, window_bounds = array<i64: 2, 8, 8, 16>}]} {
    %c0 = arith.constant 0 : index
    %c0_0 = arith.constant 0 : index
    %c0_1 = arith.constant 0 : index
    %c0_2 = arith.constant 0 : index
    %0 = vector.load %arg1[%c0, %c0_0, %c0_1, %c0_2] : memref<2x8x8x16xbf16, #tpu.memory_space<vmem>>, vector<2x8x8x16xbf16>
    %1 = vector.shape_cast %0 : vector<2x8x8x16xbf16> to vector<128x16xbf16>
    %c0_3 = arith.constant 0 : index
    %c0_4 = arith.constant 0 : index
    %2 = vector.load %arg2[%c0_3, %c0_4] : memref<16x4xbf16, #tpu.memory_space<vmem>>, vector<16x4xbf16>
    %cst = arith.constant dense<0.000000e+00> : vector<128x4xf32>
    %3 = tpu.matmul %1, %2, %cst {dimension_numbers = #tpu.dot_dimension_numbers<[1], [0], [0], [1], [0, 0, 1, 1], [], []>} : vector<128x16xbf16>, vector<16x4xbf16>, vector<128x4xf32> -> vector<128x4xf32>
    %c0_5 = arith.constant 0 : index
    %c0_6 = arith.constant 0 : index
    %4 = vector.load %arg3[%c0_5, %c0_6] : memref<1x4xf32, #tpu.memory_space<vmem>>, vector<1x4xf32>
    %5 = vector.broadcast %4 : vector<1x4xf32> to vector<128x4xf32>
    %6 = arith.mulf %3, %5 : vector<128x4xf32>
    %c0_7 = arith.constant 0 : index
    %c0_8 = arith.constant 0 : index
    %7 = vector.load %arg4[%c0_7, %c0_8] : memref<1x4xf32, #tpu.memory_space<vmem>>, vector<1x4xf32>
    %8 = vector.broadcast %7 : vector<1x4xf32> to vector<128x4xf32>
    %9 = arith.addf %6, %8 : vector<128x4xf32>
    %cst_9 = arith.constant 0.000000e+00 : f32
    %10 = vector.broadcast %cst_9 : f32 to vector<128x4xf32>
    %11 = arith.maximumf %9, %10 : vector<128x4xf32>
    %cst_10 = arith.constant 0.000000e+00 : f32
    %12 = vector.broadcast %cst_10 : f32 to vector<2x1x10x4xf32>
    %cst_11 = arith.constant 0.000000e+00 : f32
    %13 = vector.broadcast %cst_11 : f32 to vector<2x10x1x4xf32>
    %c0_12 = arith.constant 0 : index
    %c0_13 = arith.constant 0 : index
    %c0_14 = arith.constant 0 : index
    %c0_15 = arith.constant 0 : index
    %14 = vector.load %arg12[%c0_12, %c0_13, %c0_14, %c0_15] : memref<2x10x10x4xf32, #tpu.memory_space<vmem>>, vector<2x1x10x4xf32>
    tpu.vector_store %arg12[%c0_12, %c0_13, %c0_14, %c0_15], %12 {strides = array<i32>} : memref<2x10x10x4xf32, #tpu.memory_space<vmem>>, vector<2x1x10x4xf32>,
    %c0_16 = arith.constant 0 : index
    %c9 = arith.constant 9 : index
    %c0_17 = arith.constant 0 : index
    %c0_18 = arith.constant 0 : index
    %15 = vector.load %arg12[%c0_16, %c9, %c0_17, %c0_18] : memref<2x10x10x4xf32, #tpu.memory_space<vmem>>, vector<2x1x10x4xf32>
    tpu.vector_store %arg12[%c0_16, %c9, %c0_17, %c0_18], %12 {strides = array<i32>} : memref<2x10x10x4xf32, #tpu.memory_space<vmem>>, vector<2x1x10x4xf32>,
    %c0_19 = arith.constant 0 : index
    %c0_20 = arith.constant 0 : index
    %c0_21 = arith.constant 0 : index
    %c0_22 = arith.constant 0 : index
    %16 = vector.load %arg12[%c0_19, %c0_20, %c0_21, %c0_22] : memref<2x10x10x4xf32, #tpu.memory_space<vmem>>, vector<2x10x1x4xf32>
    tpu.vector_store %arg12[%c0_19, %c0_20, %c0_21, %c0_22], %13 {strides = array<i32>} : memref<2x10x10x4xf32, #tpu.memory_space<vmem>>, vector<2x10x1x4xf32>,
    %c0_23 = arith.constant 0 : index
    %c0_24 = arith.constant 0 : index
    %c9_25 = arith.constant 9 : index
    %c0_26 = arith.constant 0 : index
    %17 = vector.load %arg12[%c0_23, %c0_24, %c9_25, %c0_26] : memref<2x10x10x4xf32, #tpu.memory_space<vmem>>, vector<2x10x1x4xf32>
    tpu.vector_store %arg12[%c0_23, %c0_24, %c9_25, %c0_26], %13 {strides = array<i32>} : memref<2x10x10x4xf32, #tpu.memory_space<vmem>>, vector<2x10x1x4xf32>,
    %18 = vector.shape_cast %11 : vector<128x4xf32> to vector<2x8x8x4xf32>
    %c0_27 = arith.constant 0 : index
    %c1 = arith.constant 1 : index
    %c1_28 = arith.constant 1 : index
    %c0_29 = arith.constant 0 : index
    %19 = vector.load %arg12[%c0_27, %c1, %c1_28, %c0_29] : memref<2x10x10x4xf32, #tpu.memory_space<vmem>>, vector<2x8x8x4xf32>
    tpu.vector_store %arg12[%c0_27, %c1, %c1_28, %c0_29], %18 {strides = array<i32>} : memref<2x10x10x4xf32, #tpu.memory_space<vmem>>, vector<2x8x8x4xf32>,
    %c0_30 = arith.constant 0 : index
    %c0_31 = arith.constant 0 : index
    %20 = vector.load %arg5[%c0_30, %c0_31] : memref<9x4xf32, #tpu.memory_space<vmem>>, vector<9x4xf32>
    %cst_32 = arith.constant 0.000000e+00 : f32
    %21 = vector.broadcast %cst_32 : f32 to vector<2x8x8x4xf32>
    %c0_33 = arith.constant 0 : index
    %c0_34 = arith.constant 0 : index
    %c0_35 = arith.constant 0 : index
    %c0_36 = arith.constant 0 : index
    %22 = vector.load %arg12[%c0_33, %c0_34, %c0_35, %c0_36] : memref<2x10x10x4xf32, #tpu.memory_space<vmem>>, vector<2x8x10x4xf32>
    %23 = vector.extract_strided_slice %22 {offsets = [0, 0, 0, 0], sizes = [2, 8, 8, 4], strides = [1, 1, 1, 1]} : vector<2x8x10x4xf32> to vector<2x8x8x4xf32>
    %24 = vector.extract_strided_slice %20 {offsets = [0, 0], sizes = [1, 4], strides = [1, 1]} : vector<9x4xf32> to vector<1x4xf32>
    %25 = vector.shape_cast %24 : vector<1x4xf32> to vector<4xf32>
    %26 = vector.shape_cast %25 : vector<4xf32> to vector<1x1x1x4xf32>
    %27 = vector.broadcast %26 : vector<1x1x1x4xf32> to vector<2x8x8x4xf32>
    %28 = arith.mulf %23, %27 : vector<2x8x8x4xf32>
    %29 = arith.addf %21, %28 : vector<2x8x8x4xf32>
    %30 = vector.extract_strided_slice %22 {offsets = [0, 0, 1, 0], sizes = [2, 8, 8, 4], strides = [1, 1, 1, 1]} : vector<2x8x10x4xf32> to vector<2x8x8x4xf32>
    %31 = vector.extract_strided_slice %20 {offsets = [1, 0], sizes = [1, 4], strides = [1, 1]} : vector<9x4xf32> to vector<1x4xf32>
    %32 = vector.shape_cast %31 : vector<1x4xf32> to vector<4xf32>
    %33 = vector.shape_cast %32 : vector<4xf32> to vector<1x1x1x4xf32>
    %34 = vector.broadcast %33 : vector<1x1x1x4xf32> to vector<2x8x8x4xf32>
    %35 = arith.mulf %30, %34 : vector<2x8x8x4xf32>
    %36 = arith.addf %29, %35 : vector<2x8x8x4xf32>
    %37 = vector.extract_strided_slice %22 {offsets = [0, 0, 2, 0], sizes = [2, 8, 8, 4], strides = [1, 1, 1, 1]} : vector<2x8x10x4xf32> to vector<2x8x8x4xf32>
    %38 = vector.extract_strided_slice %20 {offsets = [2, 0], sizes = [1, 4], strides = [1, 1]} : vector<9x4xf32> to vector<1x4xf32>
    %39 = vector.shape_cast %38 : vector<1x4xf32> to vector<4xf32>
    %40 = vector.shape_cast %39 : vector<4xf32> to vector<1x1x1x4xf32>
    %41 = vector.broadcast %40 : vector<1x1x1x4xf32> to vector<2x8x8x4xf32>
    %42 = arith.mulf %37, %41 : vector<2x8x8x4xf32>
    %43 = arith.addf %36, %42 : vector<2x8x8x4xf32>
    %c0_37 = arith.constant 0 : index
    %c1_38 = arith.constant 1 : index
    %c0_39 = arith.constant 0 : index
    %c0_40 = arith.constant 0 : index
    %44 = vector.load %arg12[%c0_37, %c1_38, %c0_39, %c0_40] : memref<2x10x10x4xf32, #tpu.memory_space<vmem>>, vector<2x8x10x4xf32>
    %45 = vector.extract_strided_slice %44 {offsets = [0, 0, 0, 0], sizes = [2, 8, 8, 4], strides = [1, 1, 1, 1]} : vector<2x8x10x4xf32> to vector<2x8x8x4xf32>
    %46 = vector.extract_strided_slice %20 {offsets = [3, 0], sizes = [1, 4], strides = [1, 1]} : vector<9x4xf32> to vector<1x4xf32>
    %47 = vector.shape_cast %46 : vector<1x4xf32> to vector<4xf32>
    %48 = vector.shape_cast %47 : vector<4xf32> to vector<1x1x1x4xf32>
    %49 = vector.broadcast %48 : vector<1x1x1x4xf32> to vector<2x8x8x4xf32>
    %50 = arith.mulf %45, %49 : vector<2x8x8x4xf32>
    %51 = arith.addf %43, %50 : vector<2x8x8x4xf32>
    %52 = vector.extract_strided_slice %44 {offsets = [0, 0, 1, 0], sizes = [2, 8, 8, 4], strides = [1, 1, 1, 1]} : vector<2x8x10x4xf32> to vector<2x8x8x4xf32>
    %53 = vector.extract_strided_slice %20 {offsets = [4, 0], sizes = [1, 4], strides = [1, 1]} : vector<9x4xf32> to vector<1x4xf32>
    %54 = vector.shape_cast %53 : vector<1x4xf32> to vector<4xf32>
    %55 = vector.shape_cast %54 : vector<4xf32> to vector<1x1x1x4xf32>
    %56 = vector.broadcast %55 : vector<1x1x1x4xf32> to vector<2x8x8x4xf32>
    %57 = arith.mulf %52, %56 : vector<2x8x8x4xf32>
    %58 = arith.addf %51, %57 : vector<2x8x8x4xf32>
    %59 = vector.extract_strided_slice %44 {offsets = [0, 0, 2, 0], sizes = [2, 8, 8, 4], strides = [1, 1, 1, 1]} : vector<2x8x10x4xf32> to vector<2x8x8x4xf32>
    %60 = vector.extract_strided_slice %20 {offsets = [5, 0], sizes = [1, 4], strides = [1, 1]} : vector<9x4xf32> to vector<1x4xf32>
    %61 = vector.shape_cast %60 : vector<1x4xf32> to vector<4xf32>
    %62 = vector.shape_cast %61 : vector<4xf32> to vector<1x1x1x4xf32>
    %63 = vector.broadcast %62 : vector<1x1x1x4xf32> to vector<2x8x8x4xf32>
    %64 = arith.mulf %59, %63 : vector<2x8x8x4xf32>
    %65 = arith.addf %58, %64 : vector<2x8x8x4xf32>
    %c0_41 = arith.constant 0 : index
    %c2 = arith.constant 2 : index
    %c0_42 = arith.constant 0 : index
    %c0_43 = arith.constant 0 : index
    %66 = vector.load %arg12[%c0_41, %c2, %c0_42, %c0_43] : memref<2x10x10x4xf32, #tpu.memory_space<vmem>>, vector<2x8x10x4xf32>
    %67 = vector.extract_strided_slice %66 {offsets = [0, 0, 0, 0], sizes = [2, 8, 8, 4], strides = [1, 1, 1, 1]} : vector<2x8x10x4xf32> to vector<2x8x8x4xf32>
    %68 = vector.extract_strided_slice %20 {offsets = [6, 0], sizes = [1, 4], strides = [1, 1]} : vector<9x4xf32> to vector<1x4xf32>
    %69 = vector.shape_cast %68 : vector<1x4xf32> to vector<4xf32>
    %70 = vector.shape_cast %69 : vector<4xf32> to vector<1x1x1x4xf32>
    %71 = vector.broadcast %70 : vector<1x1x1x4xf32> to vector<2x8x8x4xf32>
    %72 = arith.mulf %67, %71 : vector<2x8x8x4xf32>
    %73 = arith.addf %65, %72 : vector<2x8x8x4xf32>
    %74 = vector.extract_strided_slice %66 {offsets = [0, 0, 1, 0], sizes = [2, 8, 8, 4], strides = [1, 1, 1, 1]} : vector<2x8x10x4xf32> to vector<2x8x8x4xf32>
    %75 = vector.extract_strided_slice %20 {offsets = [7, 0], sizes = [1, 4], strides = [1, 1]} : vector<9x4xf32> to vector<1x4xf32>
    %76 = vector.shape_cast %75 : vector<1x4xf32> to vector<4xf32>
    %77 = vector.shape_cast %76 : vector<4xf32> to vector<1x1x1x4xf32>
    %78 = vector.broadcast %77 : vector<1x1x1x4xf32> to vector<2x8x8x4xf32>
    %79 = arith.mulf %74, %78 : vector<2x8x8x4xf32>
    %80 = arith.addf %73, %79 : vector<2x8x8x4xf32>
    %81 = vector.extract_strided_slice %66 {offsets = [0, 0, 2, 0], sizes = [2, 8, 8, 4], strides = [1, 1, 1, 1]} : vector<2x8x10x4xf32> to vector<2x8x8x4xf32>
    %82 = vector.extract_strided_slice %20 {offsets = [8, 0], sizes = [1, 4], strides = [1, 1]} : vector<9x4xf32> to vector<1x4xf32>
    %83 = vector.shape_cast %82 : vector<1x4xf32> to vector<4xf32>
    %84 = vector.shape_cast %83 : vector<4xf32> to vector<1x1x1x4xf32>
    %85 = vector.broadcast %84 : vector<1x1x1x4xf32> to vector<2x8x8x4xf32>
    %86 = arith.mulf %81, %85 : vector<2x8x8x4xf32>
    %87 = arith.addf %80, %86 : vector<2x8x8x4xf32>
    %88 = vector.shape_cast %87 : vector<2x8x8x4xf32> to vector<128x4xf32>
    %c0_44 = arith.constant 0 : index
    %c0_45 = arith.constant 0 : index
    %89 = vector.load %arg6[%c0_44, %c0_45] : memref<1x4xf32, #tpu.memory_space<vmem>>, vector<1x4xf32>
    %90 = vector.broadcast %89 : vector<1x4xf32> to vector<128x4xf32>
    %91 = arith.mulf %88, %90 : vector<128x4xf32>
    %c0_46 = arith.constant 0 : index
    %c0_47 = arith.constant 0 : index
    %92 = vector.load %arg7[%c0_46, %c0_47] : memref<1x4xf32, #tpu.memory_space<vmem>>, vector<1x4xf32>
    %93 = vector.broadcast %92 : vector<1x4xf32> to vector<128x4xf32>
    %94 = arith.addf %91, %93 : vector<128x4xf32>
    %cst_48 = arith.constant 0.000000e+00 : f32
    %95 = vector.broadcast %cst_48 : f32 to vector<128x4xf32>
    %96 = arith.maximumf %94, %95 : vector<128x4xf32>
    %97 = arith.truncf %96 : vector<128x4xf32> to vector<128x4xbf16>
    %c0_49 = arith.constant 0 : index
    %c0_50 = arith.constant 0 : index
    %98 = vector.load %arg8[%c0_49, %c0_50] : memref<4x16xbf16, #tpu.memory_space<vmem>>, vector<4x16xbf16>
    %cst_51 = arith.constant dense<0.000000e+00> : vector<128x16xf32>
    %99 = tpu.matmul %97, %98, %cst_51 {dimension_numbers = #tpu.dot_dimension_numbers<[1], [0], [0], [1], [0, 0, 1, 1], [], []>} : vector<128x4xbf16>, vector<4x16xbf16>, vector<128x16xf32> -> vector<128x16xf32>
    %c0_52 = arith.constant 0 : index
    %c0_53 = arith.constant 0 : index
    %100 = vector.load %arg9[%c0_52, %c0_53] : memref<1x16xf32, #tpu.memory_space<vmem>>, vector<1x16xf32>
    %101 = vector.broadcast %100 : vector<1x16xf32> to vector<128x16xf32>
    %102 = arith.mulf %99, %101 : vector<128x16xf32>
    %c0_54 = arith.constant 0 : index
    %c0_55 = arith.constant 0 : index
    %103 = vector.load %arg10[%c0_54, %c0_55] : memref<1x16xf32, #tpu.memory_space<vmem>>, vector<1x16xf32>
    %104 = vector.broadcast %103 : vector<1x16xf32> to vector<128x16xf32>
    %105 = arith.addf %102, %104 : vector<128x16xf32>
    %106 = vector.shape_cast %105 : vector<128x16xf32> to vector<2x8x8x16xf32>
    %107 = arith.extf %0 : vector<2x8x8x16xbf16> to vector<2x8x8x16xf32>
    %108 = arith.addf %106, %107 : vector<2x8x8x16xf32>
    %cst_56 = arith.constant 0.000000e+00 : f32
    %109 = vector.broadcast %cst_56 : f32 to vector<2x8x8x16xf32>
    %110 = arith.maximumf %108, %109 : vector<2x8x8x16xf32>
    %111 = arith.truncf %110 : vector<2x8x8x16xf32> to vector<2x8x8x16xbf16>
    %c0_57 = arith.constant 0 : index
    %c0_58 = arith.constant 0 : index
    %c0_59 = arith.constant 0 : index
    %c0_60 = arith.constant 0 : index
    %112 = vector.load %arg11[%c0_57, %c0_58, %c0_59, %c0_60] : memref<2x8x8x16xbf16, #tpu.memory_space<vmem>>, vector<2x8x8x16xbf16>
    tpu.vector_store %arg11[%c0_57, %c0_58, %c0_59, %c0_60], %111 {strides = array<i32>} : memref<2x8x8x16xbf16, #tpu.memory_space<vmem>>, vector<2x8x8x16xbf16>,
    return
  }
  func.func @transform_0(%arg0: i32) -> (i32, i32, i32, i32) {
    %c0_i32 = arith.constant 0 : i32
    %c0_i32_0 = arith.constant 0 : i32
    %c0_i32_1 = arith.constant 0 : i32
    %c0_i32_2 = arith.constant 0 : i32
    return %arg0, %c0_i32, %c0_i32_0, %c0_i32_1 : i32, i32, i32, i32
  }
  func.func @transform_1(%arg0: i32) -> (i32, i32) {
    %c0_i32 = arith.constant 0 : i32
    %c0_i32_0 = arith.constant 0 : i32
    %c0_i32_1 = arith.constant 0 : i32
    return %c0_i32, %c0_i32_0 : i32, i32
  }
  func.func @transform_2(%arg0: i32) -> (i32, i32) {
    %c0_i32 = arith.constant 0 : i32
    %c0_i32_0 = arith.constant 0 : i32
    %c0_i32_1 = arith.constant 0 : i32
    return %c0_i32, %c0_i32_0 : i32, i32
  }
  func.func @transform_3(%arg0: i32) -> (i32, i32) {
    %c0_i32 = arith.constant 0 : i32
    %c0_i32_0 = arith.constant 0 : i32
    %c0_i32_1 = arith.constant 0 : i32
    return %c0_i32, %c0_i32_0 : i32, i32
  }
  func.func @transform_4(%arg0: i32) -> (i32, i32) {
    %c0_i32 = arith.constant 0 : i32
    %c0_i32_0 = arith.constant 0 : i32
    %c0_i32_1 = arith.constant 0 : i32
    return %c0_i32, %c0_i32_0 : i32, i32
  }
  func.func @transform_5(%arg0: i32) -> (i32, i32) {
    %c0_i32 = arith.constant 0 : i32
    %c0_i32_0 = arith.constant 0 : i32
    %c0_i32_1 = arith.constant 0 : i32
    return %c0_i32, %c0_i32_0 : i32, i32
  }
  func.func @transform_6(%arg0: i32) -> (i32, i32) {
    %c0_i32 = arith.constant 0 : i32
    %c0_i32_0 = arith.constant 0 : i32
    %c0_i32_1 = arith.constant 0 : i32
    return %c0_i32, %c0_i32_0 : i32, i32
  }
  func.func @transform_7(%arg0: i32) -> (i32, i32) {
    %c0_i32 = arith.constant 0 : i32
    %c0_i32_0 = arith.constant 0 : i32
    %c0_i32_1 = arith.constant 0 : i32
    return %c0_i32, %c0_i32_0 : i32, i32
  }
  func.func @transform_8(%arg0: i32) -> (i32, i32) {
    %c0_i32 = arith.constant 0 : i32
    %c0_i32_0 = arith.constant 0 : i32
    %c0_i32_1 = arith.constant 0 : i32
    return %c0_i32, %c0_i32_0 : i32, i32
  }
  func.func @transform_9(%arg0: i32) -> (i32, i32) {
    %c0_i32 = arith.constant 0 : i32
    %c0_i32_0 = arith.constant 0 : i32
    %c0_i32_1 = arith.constant 0 : i32
    return %c0_i32, %c0_i32_0 : i32, i32
  }
  func.func @transform_10(%arg0: i32) -> (i32, i32, i32, i32) {
    %c0_i32 = arith.constant 0 : i32
    %c0_i32_0 = arith.constant 0 : i32
    %c0_i32_1 = arith.constant 0 : i32
    %c0_i32_2 = arith.constant 0 : i32
    return %arg0, %c0_i32, %c0_i32_0, %c0_i32_1 : i32, i32, i32, i32
  }
}

</mosaic_0001>

<bundles_post_ra>
// kernel: tpu_custom_call.1
= control target key start
LH: loop header
LB: loop body
LE: loop exit
PB: predicated region body
PF: predicated region fallthrough
CT: control target
= control target key end

     0   :  { %15 = vsyncpa [#allocation4], 0  ;;  %s3354_s0 = inlined_call_operand.hbm [shape: bf16[4,8,8,16], index: 0, kind: input, shape index: {}]   ;;  %s3355_s1 = inlined_call_operand.vmem [shape: bf16[16,4], index: 1, kind: input, shape index: {}]   ;;  %s3356_s2 = inlined_call_operand.vmem [shape: f32[1,4], index: 2, kind: input, shape index: {}]   ;;  %s3357_s3 = inlined_call_operand.vmem [shape: f32[1,4], index: 3, kind: input, shape index: {}]   ;;  %s3358_s4 = inlined_call_operand.vmem [shape: f32[9,4], index: 4, kind: input, shape index: {}]   ;;  %s3359_s5 = inlined_call_operand.vmem [shape: f32[1,4], index: 5, kind: input, shape index: {}]   ;;  %s3360_s6 = inlined_call_operand.vmem [shape: f32[1,4], index: 6, kind: input, shape index: {}]   ;;  %s3361_s7 = inlined_call_operand.vmem [shape: bf16[4,16], index: 7, kind: input, shape index: {}]   ;;  %s3362_s8 = inlined_call_operand.vmem [shape: f32[1,16], index: 8, kind: input, shape index: {}]   ;;  %s3363_s9 = inlined_call_operand.vmem [shape: f32[1,16], index: 9, kind: input, shape index: {}]   ;;  %s3364_s10 = inlined_call_operand.hbm [shape: bf16[4,8,8,16], index: 10, kind: output, shape index: {}]  }
   0x1   :  { %17 = vsyncpa [#allocation4 + $0x1], 0 }
   0x2   :  { %18 = vsyncpa [#allocation5], 0 }
   0x3   :  { %20 = vsyncpa [#allocation5 + $0x1], 0  ;;  %s2372_s13 = smov 0   ;;  %s2374_s14 = smov 0  }
   0x4   :  { %s2376_s15 = smov 0   ;;  %s2378_s16 = smov 0  }
   0x5 LB: > { %3369 = sst [smem:[#allocation9_spill]] %s2306_s15  ;;  %s2393_s17 = sadd.s32 4294967295, %s2310_s16   ;;  %s2310_s16 = sphi %s2378_s16, %s3380_s16   ;;  %s2306_s15 = sphi %s2376_s15, %s3382_s15   ;;  %s2302_s14 = sphi %s2374_s14, %s3384_s14   ;;  %s2298_s13 = sphi %s2372_s13, %s3383_s13  }
   0x6   : > { %s2070_s18 = sadd.s32 4294967294, %s2310_s16   ;;  %s2397_s19 = sadd.s32 1, %s2310_s16  }
   0x7   : > { %3370 = sst [smem:[#allocation10_spill]] %s2397_s19  ;;  %s33_s20 = sadd.s32 1, %s2306_s15 }
   0x8   : > { %s30_s21 = ssub.s32 %s2310_s16, %s2397_s19  ;;  %p40_p0 = scmp.ne.s32.totalorder %s2306_s15, %s2302_s14 }
   0x9   : > { %p31_p1 = scmp.eq.s32.totalorder %s30_s21, 0  ;;  %p41_p2 = scmp.eq.s32.totalorder %s2310_s16, 0 }
   0xa   : > { %p46_p3 = scmp.ne.s32.totalorder %s2302_s14, %s2298_s13  ;;  %p47_p4 = scmp.eq.s32.totalorder %s2393_s17, 0 }
   0xb   : > { %s2409_s22 = scalar_select %p31_p1, %s2306_s15, %s33_s20  }
   0xc   : > { %p2411_p5 = por %p41_p2, %p40_p0  ;;  %p2415_p6 = por %p47_p4, %p46_p3 }
   0xd   : > { %3371 = sst [smem:[#allocation11_spill]] %s2409_s22  ;;  %p259_p7 = scmp.eq.s32.totalorder %s2393_s17, 1 }
   0xe   : > { %p265_p8 = scmp.eq.s32.totalorder %s2070_s18, 1  ;;  %p2165_p10 = scmp.lt.s32.totalorder %s2310_s16, 2 }
   0xf   : > { %p2422_p11 = por %p259_p7, %p40_p0  ;;  %s312_s27 = sand.u32 1, %s2306_s15  }
  0x10   : > { %p2426_p12 = por %p265_p8, %p46_p3  ;;  %s2139_s28 = sshll.u32 %s2310_s16, 6 }
  0x11   : > { %s2073_s29 = sshll.u32 %s312_s27, 6  ;;  %s322_s12 = scalar_lea.hbm %s3354_s0, %s2139_s28 }
  0x12   : > { %s3375_s26 = scalar_select %p2426_p12, 1, 0 }
  0x13   : > { %s323_s20 = sshll.u32 %s322_s12, 4  ;;  %s316_s18 = scalar_lea.vmem [#allocation3], %s2073_s29  ;;  %s324_s20 = int_to_ptr.hbm [resolvable:$true] %s323_s20 }
  0x14   : > { %3376 = sst [smem:[#allocation12_spill]] %s3375_s26  ;;  %s325_s21 = sshll.u32 %s316_s18, 4  ;;  %s326_s21 = int_to_ptr.vmem [resolvable:$true] %s325_s21 }
  0x15   : > { %p2437_p13 = pnand %p2165_p10, %p2411_p5  ;;  %p2077_p0 = scmp.ge.s32.totalorder %s2310_s16, 1 }
  0x16   : > { %p333_p1 = scmp.lt.s32.totalorder %s2310_s16, 3  ;;  %s313_s15 = scalar_lea.sflag [#allocation4], %s312_s27 }
  0x17   : > { %s2214_s19 = sshra.s32 %s324_s20, 4  ;;  %p2218_p3 = pneg %p2437_p13  ;;  %s2215_s19 = int_to_ptr.hbm [resolvable:$true] %s2214_s19 }
  0x18   : > { %s2216_s26 = scalar_lea.hbm %s2215_s19, 64  ;;  %s2221_s23 = scalar_lea.hbm %s3354_s0, 128 }
  0x19   : > { %p2217_p2 = scmp.ne.s32.totalorder %s2215_s19, %s2216_s26  ;;  %p2222_p5 = scmp.lt.s32.totalorder %s2215_s19, %s3354_s0 }
  0x1a   : > { %p2223_p8 = scmp.lt.s32.totalorder %s2221_s23, %s2216_s26 }
  0x1b   : > { %p2219_p4 = pnand %p2218_p3, %p2217_p2 }
  0x1c   : > { %p2224_p10 = por %p2223_p8, %p2222_p5 }
  0x1d   : > { %p2220_p7 = pneg %p2219_p4 }
  0x1f   : > { %p2225_p9 = pnand %p2224_p10, %p2220_p7 }
  0x21   : > { %2228 = shalt.err (!%p2225_p9)
}
  0x22   : > { %s2312_s27 = smov 64   ;;  %s2313_s12 = smov 4  }
  0x23   : > { %2160 = dma.hbm_to_vmem [thread:$0]  (!%p2437_p13), %s324_s20, 1024, %s326_s21, %s313_s15, %s2312_s27, %s2312_s27, %s2313_s12  }
  0x24   : > { %p334_p2 = pnand %p2077_p0, %p333_p1 }
  0x25   : > { %s2458_s18 = sand.u32 (!%p334_p2), 1, %s2302_s14  }
  0x26   : > { %337 = sbr.rel (%p334_p2) target bundleno = 536 (0x218), region = 60  ;;  %s2078_s19 = sshll.u32 (!%p334_p2), %s2458_s18, 6 }
  0x27   : > { %s340_s26 = scalar_lea.sflag (!%p334_p2), [#allocation4], %s2458_s18  ;;  %s2464_s28 = scalar_lea.vmem (!%p334_p2), [#allocation3], %s2078_s19 }
  0x2b   : > { %2289 = dma.done.wait (%p2415_p6), %s340_s26, 1024  }
  0x2c   : > { %2291 = vsyncadd (%p2415_p6), %s340_s26, 4294966272  ;;  %v2148_v0 = vld [vmem:[%s3355_s1] sm:$0xff]  ;;  %vm448_vm0 = vcmask 130048   ;;  %v2141_v3 = vld [vmem:[%s2464_s28 + $0x8] sm:$0xff]  ;;  %vm578_vm1 = vcmask 31744   ;;  %vm580_vm2 = vcmask 25600  }
  0x2d   : > { %v2140_v1 = vld [vmem:[%s2464_s28] sm:$0xff]  ;;  %480 = vmatpush.bf16.msra.mxu0 %v2148_v0  ;;  %2151 = vmatpush.bf16.msra.mxu2 %v2148_v0  ;;  %v2145_v4 = vld [vmem:[%s2464_s28 + $0x28] sm:$0xff]  ;;  %v2142_v5 = vld [vmem:[%s2464_s28 + $0x10] sm:$0xff]  ;;  %v2314_v9 = vmov 0.0   ;;  %vm589_vm3 = vcmask 24576   ;;  %vm779_vm4 = vcmask 1046528  }
  0x2e   : > { %v2144_v2 = vld [vmem:[%s2464_s28 + $0x20] sm:$0xff]  ;;  %v2146_v6 = vld [vmem:[%s2464_s28 + $0x30] sm:$0xff]  ;;  %v2143_v7 = vld [vmem:[%s2464_s28 + $0x18] sm:$0xff]  ;;  %579 = vst.msk [vmem:[#allocation2] sm:$0xff] %vm578_vm1, %v2314_v9  ;;  %vm925_vm5 = vcmask 1045504   ;;  %vm1806_vm6 = vcmask 1041408  }
  0x2f   : > { %v2147_v8 = vld [vmem:[%s2464_s28 + $0x38] sm:$0xff]  ;;  %581 = vst.msk [vmem:[#allocation2 + $0x8] sm:$0x3] %vm580_vm2, %v2314_v9  ;;  %v2532_v10 = vld [vmem:[%s3358_s4] sm:$0xff]  ;;  %vm1963_vm7 = vcmask 125952   ;;  %s3251_s24 = scalar_lea.vmem [#allocation6], %s2078_s19 }
  0x30   : > { %2116 = vmatmul.msk.bf16.vlgmr.msra.gmra.mxu0 %vm448_vm0, %v2140_v1  ;;  %2120 = vmatmul.msk.bf16.vlgmr.msra.gmra.mxu2 %vm448_vm0, %v2144_v2  ;;  %590 = vst.msk [vmem:[#allocation2] sm:$0x1] %vm589_vm3, %v2314_v9  ;;  %v2541_v11 = vperm.slane %v2532_v10, 1  ;;  %v2550_v14 = vld [vmem:[%s3356_s2] ss:$0 sm:$0xff]  ;;  %v2555_v15 = vperm.slane %v2532_v10, 2 }
  0x31   : > { %591 = vst.msk [vmem:[#allocation2 + $0x10] sm:$0x1] %vm589_vm3, %v2314_v9  ;;  %v2562_v16 = vld [vmem:[%s3357_s3] ss:$0 sm:$0xff]  ;;  %v2574_v21 = vperm.slane %v2532_v10, 0  ;;  %v2609_v43 = vperm.slane %v2532_v10, 3 }
  0x32   : > { %592 = vst.msk [vmem:[#allocation2 + $0x20] sm:$0x1] %vm589_vm3, %v2314_v9  ;;  %v1781_v40 = vld [vmem:[%s3361_s7] sm:$0x3]  ;;  %v2612_v44 = vperm.slane %v2532_v10, 4  ;;  %v2618_v50 = vperm.slane %v2532_v10, 5 }
  0x33   : > { %593 = vst.msk [vmem:[#allocation2 + $0x30] sm:$0x1] %vm589_vm3, %v2314_v9  ;;  %v1808_v42 = vsel %vm1806_vm6, %v1781_v40, 0  ;;  %v2621_v51 = vperm.slane %v2532_v10, 6  ;;  %v2624_v52 = vperm.slane %v2532_v10, 7  ;;  %s2150_s19 = sshll.u32 %s2393_s17, 6 }
  0x34   : > { %610 = vst.msk [vmem:[#allocation2 + $0x9] sm:$0x1] %vm589_vm3, %v2314_v9  ;;  %1817 = vmatpush.bf16.msra.mxu1 %v1808_v42  ;;  %2152 = vmatpush.bf16.msra.mxu3 %v1808_v42  ;;  %s1994_s29 = sshll.u32 %s3251_s24, 4  ;;  %s1981_s17 = scalar_lea.sflag [#allocation5], %s2458_s18  ;;  %s1995_s29 = int_to_ptr.vmem [resolvable:$true] %s1994_s29 }
  0x35   : > { %611 = vst.msk [vmem:[#allocation2 + $0x19] sm:$0x1] %vm589_vm3, %v2314_v9  ;;  %s2264_s26 = scalar_lea.hbm %s3364_s10, 128 }
  0x36   : > { %612 = vst.msk [vmem:[#allocation2 + $0x29] sm:$0x1] %vm589_vm3, %v2314_v9 }
  0x37   : > { %613 = vst.msk [vmem:[#allocation2 + $0x39] sm:$0x1] %vm589_vm3, %v2314_v9  ;;  %v649_v12 = vld [vmem:[#allocation2] sm:$0xff] }
  0x38   : > { %582 = vst.msk [vmem:[#allocation2 + $0xa0] sm:$0xff] %vm578_vm1, %v2314_v9  ;;  %v715_v17 = vmul.f32 %v2541_v11, %v649_v12  ;;  %v861_v22 = vmul.f32 %v2555_v15, %v649_v12  ;;  %v682_v29 = vmul.f32 %v2574_v21, %v649_v12 }
  0x39   : > { %583 = vst.msk [vmem:[#allocation2 + $0xa8] sm:$0x3] %vm580_vm2, %v2314_v9 }
  0x3a   : > { %585 = vst.msk [vmem:[#allocation2 + $0x90] sm:$0xff] %vm578_vm1, %v2314_v9  ;;  %v780_v24 = vrot.slane %v715_v17, 1  ;;  %v926_v32 = vrot.slane %v861_v22, 2 }
  0x3b   : > { %586 = vst.msk [vmem:[#allocation2 + $0x98] sm:$0x3] %vm580_vm2, %v2314_v9  ;;  %v650_v13 = vld [vmem:[#allocation2 + $0x8] sm:$0x3] }
  0x3c   : > { %587 = vst.msk [vmem:[#allocation2 + $0x130] sm:$0xff] %vm578_vm1, %v2314_v9  ;;  %v716_v18 = vmul.f32 %v2541_v11, %v650_v13  ;;  %v862_v26 = vmul.f32 %v2555_v15, %v650_v13 }
  0x3d   : > { %588 = vst.msk [vmem:[#allocation2 + $0x138] sm:$0x3] %vm580_vm2, %v2314_v9 }
  0x3e   : > { %594 = vst.msk [vmem:[#allocation2 + $0x40] sm:$0x1] %vm589_vm3, %v2314_v9  ;;  %v781_v25 = vrot.slane %v716_v18, 1  ;;  %v927_v33 = vrot.slane %v862_v26, 2 }
  0x3f   : > { %595 = vst.msk [vmem:[#allocation2 + $0x50] sm:$0x1] %vm589_vm3, %v2314_v9 }
  0x40   : > { %2117 = vmatmul.msk.bf16.gmra.mxu0 %vm448_vm0, %v2141_v3  ;;  %2121 = vmatmul.msk.bf16.gmra.mxu2 %vm448_vm0, %v2145_v4  ;;  %596 = vst.msk [vmem:[#allocation2 + $0x60] sm:$0x1] %vm589_vm3, %v2314_v9  ;;  %v782_v31 = vsel %vm779_vm4, %v780_v24, %v781_v25  ;;  %v928_v41 = vsel %vm925_vm5, %v926_v32, %v927_v33 }
  0x41   : > { %597 = vst.msk [vmem:[#allocation2 + $0x70] sm:$0x1] %vm589_vm3, %v2314_v9  ;;  %v844_v37 = vadd.f32 %v782_v31, %v682_v29 }
  0x42   : > { %598 = vst.msk [vmem:[#allocation2 + $0x80] sm:$0x1] %vm589_vm3, %v2314_v9 }
  0x43   : > { %601 = vst.msk [vmem:[#allocation2 + $0xb0] sm:$0x1] %vm589_vm3, %v2314_v9  ;;  %v990_v49 = vadd.f32 %v928_v41, %v844_v37 }
  0x44   : > { %602 = vst.msk [vmem:[#allocation2 + $0xc0] sm:$0x1] %vm589_vm3, %v2314_v9 }
  0x45   : > { %603 = vst.msk [vmem:[#allocation2 + $0xd0] sm:$0x1] %vm589_vm3, %v2314_v9 }
  0x46   : > { %604 = vst.msk [vmem:[#allocation2 + $0xe0] sm:$0x1] %vm589_vm3, %v2314_v9 }
  0x47   : > { %605 = vst.msk [vmem:[#allocation2 + $0xf0] sm:$0x1] %vm589_vm3, %v2314_v9 }
  0x48   : > { %606 = vst.msk [vmem:[#allocation2 + $0x100] sm:$0x1] %vm589_vm3, %v2314_v9 }
  0x49   : > { %607 = vst.msk [vmem:[#allocation2 + $0x110] sm:$0x1] %vm589_vm3, %v2314_v9 }
  0x4a   : > { %608 = vst.msk [vmem:[#allocation2 + $0x120] sm:$0x1] %vm589_vm3, %v2314_v9 }
  0x4b   : > { %614 = vst.msk [vmem:[#allocation2 + $0x49] sm:$0x1] %vm589_vm3, %v2314_v9 }
  0x4c   : > { %615 = vst.msk [vmem:[#allocation2 + $0x59] sm:$0x1] %vm589_vm3, %v2314_v9 }
  0x4d   : > { %616 = vst.msk [vmem:[#allocation2 + $0x69] sm:$0x1] %vm589_vm3, %v2314_v9 }
  0x4e   : > { %617 = vst.msk [vmem:[#allocation2 + $0x79] sm:$0x1] %vm589_vm3, %v2314_v9 }
  0x4f   : > { %618 = vst.msk [vmem:[#allocation2 + $0x89] sm:$0x1] %vm589_vm3, %v2314_v9 }
  0x50   : > { %2118 = vmatmul.msk.bf16.gmra.mxu0 %vm448_vm0, %v2142_v5  ;;  %2122 = vmatmul.msk.bf16.gmra.mxu2 %vm448_vm0, %v2146_v6  ;;  %621 = vst.msk [vmem:[#allocation2 + $0xb9] sm:$0x1] %vm589_vm3, %v2314_v9 }
  0x51   : > { %622 = vst.msk [vmem:[#allocation2 + $0xc9] sm:$0x1] %vm589_vm3, %v2314_v9 }
  0x52   : > { %623 = vst.msk [vmem:[#allocation2 + $0xd9] sm:$0x1] %vm589_vm3, %v2314_v9 }
  0x53   : > { %624 = vst.msk [vmem:[#allocation2 + $0xe9] sm:$0x1] %vm589_vm3, %v2314_v9 }
  0x54   : > { %625 = vst.msk [vmem:[#allocation2 + $0xf9] sm:$0x1] %vm589_vm3, %v2314_v9 }
  0x55   : > { %626 = vst.msk [vmem:[#allocation2 + $0x109] sm:$0x1] %vm589_vm3, %v2314_v9 }
  0x56   : > { %627 = vst.msk [vmem:[#allocation2 + $0x119] sm:$0x1] %vm589_vm3, %v2314_v9 }
  0x57   : > { %628 = vst.msk [vmem:[#allocation2 + $0x129] sm:$0x1] %vm589_vm3, %v2314_v9 }
  0x58   : > { %599 = vst.msk [vmem:[#allocation2 + $0x90] sm:$0x1] %vm589_vm3, %v2314_v9 }
  0x59   : > { %600 = vst.msk [vmem:[#allocation2 + $0xa0] sm:$0x1] %vm589_vm3, %v2314_v9 }
  0x5a   : > { %609 = vst.msk [vmem:[#allocation2 + $0x130] sm:$0x1] %vm589_vm3, %v2314_v9 }
  0x5b   : > { %619 = vst.msk [vmem:[#allocation2 + $0x99] sm:$0x1] %vm589_vm3, %v2314_v9 }
  0x5c   : > { %620 = vst.msk [vmem:[#allocation2 + $0xa9] sm:$0x1] %vm589_vm3, %v2314_v9 }
  0x5d   : > { %629 = vst.msk [vmem:[#allocation2 + $0x139] sm:$0x1] %vm589_vm3, %v2314_v9 }
  0x60   : > { %2119 = vmatmul.msk.bf16.gmra.mxu0 %vm448_vm0, %v2143_v7  ;;  %2123 = vmatmul.msk.bf16.gmra.mxu2 %vm448_vm0, %v2147_v8 }
  0xad   : > { %v482_v19 = vpop.f32.mrf.mxu0 }
  0xae   : > { %v526_v20 = vmul.f32 %v2550_v14, %v482_v19 }
  0xb0   : > { %v546_v23 = vadd.f32 %v2562_v16, %v526_v20 }
  0xb2   : > { %v562_v27 = vmax.f32 %v546_v23, 0.0 }
  0xb3   : > { %v502_v28 = vpop.f32.mrf.mxu2 }
  0xb4   : > { %631 = vst.msk [vmem:[#allocation2 + $0x11] sm:$0xff] %vm578_vm1, %v562_v27  ;;  %v534_v30 = vmul.f32 %v2550_v14, %v502_v28 }
  0xb5   : > { %v484_v34 = vpop.f32.mrf.mxu0 }
  0xb6   : > { %v554_v35 = vadd.f32 %v2562_v16, %v534_v30  ;;  %v527_v36 = vmul.f32 %v2550_v14, %v484_v34 }
  0xb8   : > { %v570_v38 = vmax.f32 %v554_v35, 0.0  ;;  %v547_v39 = vadd.f32 %v2562_v16, %v527_v36 }
  0xba   : > { %639 = vst.msk [vmem:[#allocation2 + $0xb1] sm:$0xff] %vm578_vm1, %v570_v38  ;;  %v563_v45 = vmax.f32 %v547_v39, 0.0 }
  0xbb   : > { %v504_v46 = vpop.f32.mrf.mxu2  ;;  %v651_v47 = vld [vmem:[#allocation2 + $0x10] sm:$0xff]  ;;  %v652_v48 = vld [vmem:[#allocation2 + $0x18] sm:$0x3] }
  0xbc   : > { %632 = vst.msk [vmem:[#allocation2 + $0x21] sm:$0xff] %vm578_vm1, %v563_v45  ;;  %v535_v53 = vmul.f32 %v2550_v14, %v504_v46  ;;  %v683_v54 = vmul.f32 %v2574_v21, %v651_v47  ;;  %v717_v55 = vmul.f32 %v2541_v11, %v651_v47  ;;  %v718_v56 = vmul.f32 %v2541_v11, %v652_v48  ;;  %v1007_v57 = vld [vmem:[#allocation2 + $0x18] sm:$0x3]  ;;  %v2686_v45 = vld [vmem:[%s3358_s4 + $0x8] ss:$0 sm:$0xff] }
  0xbd   : > { %v487_v58 = vpop.f32.mrf.mxu0  ;;  %v863_v59 = vmul.f32 %v2555_v15, %v651_v47  ;;  %v864_v60 = vmul.f32 %v2555_v15, %v652_v48  ;;  %v1039_v61 = vmul.f32 %v2609_v43, %v651_v47  ;;  %v1072_v62 = vmul.f32 %v2612_v44, %v651_v47 }
  0xbe   : > { %v555_v63 = vadd.f32 %v2562_v16, %v535_v53  ;;  %v528_v0 = vmul.f32 %v2550_v14, %v487_v58  ;;  %v783_v1 = vrot.slane %v717_v55, 1  ;;  %v784_v2 = vrot.slane %v718_v56, 1 }
  0xbf   : > { %v929_v3 = vrot.slane %v863_v59, 2  ;;  %v930_v4 = vrot.slane %v864_v60, 2  ;;  %v1055_v5 = vadd.f32 %v1039_v61, %v990_v49  ;;  %v1073_v6 = vmul.f32 %v2612_v44, %v1007_v57 }
  0xc0   : > { %v571_v7 = vmax.f32 %v555_v63, 0.0  ;;  %v548_v8 = vadd.f32 %v2562_v16, %v528_v0  ;;  %v785_v10 = vsel %vm779_vm4, %v783_v1, %v784_v2  ;;  %v1136_v12 = vrot.slane %v1072_v62, 1 }
  0xc1   : > { %v845_v13 = vadd.f32 %v785_v10, %v683_v54  ;;  %v931_v17 = vsel %vm925_vm5, %v929_v3, %v930_v4  ;;  %v1137_v18 = vrot.slane %v1073_v6, 1  ;;  %v1217_v19 = vmul.f32 %v2618_v50, %v651_v47  ;;  %v2652_v20 = vld [vmem:[#allocation2 + $0xb0] sm:$0xff]  ;;  %v2654_v22 = vld [vmem:[#allocation2 + $0xb8] sm:$0x3] }
  0xc2   : > { %640 = vst.msk [vmem:[#allocation2 + $0xc1] sm:$0xff] %vm578_vm1, %v571_v7  ;;  %v564_v23 = vmax.f32 %v548_v8, 0.0  ;;  %v1218_v24 = vmul.f32 %v2618_v50, %v1007_v57  ;;  %v2660_v25 = vmul.f32 %v2574_v21, %v2652_v20  ;;  %v2664_v26 = vmul.f32 %v2541_v11, %v2652_v20 }
  0xc3   : > { %v507_v27 = vpop.f32.mrf.mxu2  ;;  %v991_v28 = vadd.f32 %v931_v17, %v845_v13  ;;  %v2666_v29 = vld [vmem:[#allocation2 + $0x20] sm:$0xff]  ;;  %v1009_v30 = vld [vmem:[#allocation2 + $0x28] sm:$0x3]  ;;  %v1138_v31 = vsel %vm779_vm4, %v1136_v12, %v1137_v18  ;;  %v1281_v32 = vrot.slane %v1217_v19, 2  ;;  %v2671_v33 = vmul.f32 %v2541_v11, %v2654_v22 }
  0xc4   : > { %633 = vst.msk [vmem:[#allocation2 + $0x31] sm:$0xff] %vm578_vm1, %v564_v23  ;;  %v536_v34 = vmul.f32 %v2550_v14, %v507_v27  ;;  %v1040_v35 = vmul.f32 %v2609_v43, %v2666_v29  ;;  %v1074_v36 = vmul.f32 %v2612_v44, %v2666_v29  ;;  %v1075_v37 = vmul.f32 %v2612_v44, %v1009_v30  ;;  %v1363_v53 = vld [vmem:[#allocation2 + $0x28] sm:$0x3] }
  0xc5   : > { %v489_v38 = vpop.f32.mrf.mxu0  ;;  %v1200_v39 = vadd.f32 %v1138_v31, %v1055_v5  ;;  %v1219_v40 = vmul.f32 %v2618_v50, %v2666_v29  ;;  %v1220_v41 = vmul.f32 %v2618_v50, %v1009_v30  ;;  %v1282_v42 = vrot.slane %v1218_v24, 2  ;;  %v665_v5 = vld [vmem:[#allocation2 + $0xa0] sm:$0xff] }
  0xc6   : > { %v556_v46 = vadd.f32 %v2562_v16, %v536_v34  ;;  %v529_v47 = vmul.f32 %v2550_v14, %v489_v38  ;;  %v1056_v48 = vadd.f32 %v1040_v35, %v991_v28  ;;  %v1139_v49 = vrot.slane %v1074_v36, 1  ;;  %v666_v38 = vld [vmem:[#allocation2 + $0xa8] sm:$0x3] }
  0xc7   : > { %v1140_v54 = vrot.slane %v1075_v37, 1  ;;  %v1283_v55 = vsel %vm925_vm5, %v1281_v32, %v1282_v42  ;;  %v1284_v56 = vrot.slane %v1219_v40, 2  ;;  %v1285_v57 = vrot.slane %v1220_v41, 2 }
  0xc8   : > { %v572_v58 = vmax.f32 %v556_v46, 0.0  ;;  %v549_v59 = vadd.f32 %v2562_v16, %v529_v47  ;;  %v1345_v60 = vadd.f32 %v1283_v55, %v1200_v39  ;;  %v1395_v61 = vmul.f32 %v2621_v51, %v2666_v29 }
  0xc9   : > { %v1141_v62 = vsel %vm779_vm4, %v1139_v49, %v1140_v54  ;;  %v1286_v63 = vsel %vm925_vm5, %v1284_v56, %v1285_v57  ;;  %v1428_v0 = vmul.f32 %v2624_v52, %v2666_v29  ;;  %v1429_v1 = vmul.f32 %v2624_v52, %v1363_v53 }
  0xca   : > { %641 = vst.msk [vmem:[#allocation2 + $0xd1] sm:$0xff] %vm578_vm1, %v572_v58  ;;  %v565_v2 = vmax.f32 %v549_v59, 0.0  ;;  %v1201_v9 = vadd.f32 %v1141_v62, %v1056_v48  ;;  %v1411_v3 = vadd.f32 %v1395_v61, %v1345_v60  ;;  %v1573_v4 = vmul.f32 %v2686_v45, %v2666_v29  ;;  %v2740_v62 = vld [vmem:[%s3360_s6] ss:$0 sm:$0xff] }
  0xcb   : > { %v509_v6 = vpop.f32.mrf.mxu2  ;;  %v2708_v7 = vld [vmem:[#allocation2 + $0x30] sm:$0xff]  ;;  %v1365_v8 = vld [vmem:[#allocation2 + $0x38] sm:$0x3]  ;;  %v1492_v10 = vrot.slane %v1428_v0, 1  ;;  %v1493_v12 = vrot.slane %v1429_v1, 1  ;;  %v1574_v13 = vmul.f32 %v2686_v45, %v1363_v53  ;;  %v690_v17 = vmul.f32 %v2574_v21, %v665_v5 }
  0xcc   : > { %634 = vst.msk [vmem:[#allocation2 + $0x41] sm:$0xff] %vm578_vm1, %v565_v2  ;;  %v537_v18 = vmul.f32 %v2550_v14, %v509_v6  ;;  %v1346_v19 = vadd.f32 %v1286_v63, %v1201_v9  ;;  %v1396_v23 = vmul.f32 %v2621_v51, %v2708_v7  ;;  %v1430_v24 = vmul.f32 %v2624_v52, %v2708_v7  ;;  %v2729_v53 = vld [vmem:[%s3359_s5] ss:$0 sm:$0xff] }
  0xcd   : > { %v492_v27 = vpop.f32.mrf.mxu0  ;;  %v1431_v28 = vmul.f32 %v2624_v52, %v1365_v8  ;;  %v1494_v30 = vsel %vm779_vm4, %v1492_v10, %v1493_v12  ;;  %v1575_v31 = vmul.f32 %v2686_v45, %v2708_v7  ;;  %v1576_v32 = vmul.f32 %v2686_v45, %v1365_v8 }
  0xce   : > { %v557_v34 = vadd.f32 %v2562_v16, %v537_v18  ;;  %v530_v35 = vmul.f32 %v2550_v14, %v492_v27  ;;  %v1412_v36 = vadd.f32 %v1396_v23, %v1346_v19  ;;  %v1495_v37 = vrot.slane %v1430_v24, 1 }
  0xcf   : > { %v1496_v39 = vrot.slane %v1431_v28, 1  ;;  %v1556_v40 = vadd.f32 %v1494_v30, %v1411_v3  ;;  %v1637_v41 = vrot.slane %v1573_v4, 2  ;;  %v1638_v42 = vrot.slane %v1574_v13, 2 }
  0xd0   : > { %v573_v46 = vmax.f32 %v557_v34, 0.0  ;;  %v550_v47 = vadd.f32 %v2562_v16, %v530_v35  ;;  %v1640_v48 = vrot.slane %v1575_v31, 2  ;;  %v1641_v49 = vrot.slane %v1576_v32, 2  ;;  %v2760_v31 = vld [vmem:[#allocation2 + $0xc0] sm:$0xff] }
  0xd1   : > { %v1497_v54 = vsel %vm779_vm4, %v1495_v37, %v1496_v39  ;;  %v1639_v55 = vsel %vm925_vm5, %v1637_v41, %v1638_v42  ;;  %v731_v56 = vmul.f32 %v2541_v11, %v665_v5  ;;  %v732_v57 = vmul.f32 %v2541_v11, %v666_v38  ;;  %v1023_v37 = vld [vmem:[#allocation2 + $0xb8] sm:$0x3]  ;;  %v1025_v41 = vld [vmem:[#allocation2 + $0xc8] sm:$0x3] }
  0xd2   : > { %642 = vst.msk [vmem:[#allocation2 + $0xe1] sm:$0xff] %vm578_vm1, %v573_v46  ;;  %v566_v58 = vmax.f32 %v550_v47, 0.0  ;;  %v1557_v59 = vadd.f32 %v1497_v54, %v1412_v36  ;;  %v1642_v60 = vsel %vm925_vm5, %v1640_v48, %v1641_v49  ;;  %v1701_v61 = vadd.f32 %v1639_v55, %v1556_v40 }
  0xd3   : > { %v512_v63 = vpop.f32.mrf.mxu2  ;;  %v804_v0 = vrot.slane %v731_v56, 1  ;;  %v805_v1 = vrot.slane %v732_v57, 1  ;;  %v807_v2 = vrot.slane %v2664_v26, 1  ;;  %v808_v9 = vrot.slane %v2671_v33, 1 }
  0xd4   : > { %635 = vst.msk [vmem:[#allocation2 + $0x51] sm:$0xff] %vm578_vm1, %v566_v58  ;;  %v538_v3 = vmul.f32 %v2550_v14, %v512_v63  ;;  %v1702_v4 = vadd.f32 %v1642_v60, %v1557_v59  ;;  %v1721_v6 = vmul.f32 %v2729_v53, %v1701_v61  ;;  %v877_v8 = vmul.f32 %v2555_v15, %v665_v5 }
  0xd5   : > { %v494_v10 = vpop.f32.mrf.mxu0  ;;  %v806_v12 = vsel %vm779_vm4, %v804_v0, %v805_v1  ;;  %v809_v13 = vsel %vm779_vm4, %v807_v2, %v808_v9  ;;  %v878_v18 = vmul.f32 %v2555_v15, %v666_v38  ;;  %v879_v26 = vmul.f32 %v2555_v15, %v2652_v20 }
  0xd6   : > { %v558_v33 = vadd.f32 %v2562_v16, %v538_v3  ;;  %v531_v19 = vmul.f32 %v2550_v14, %v494_v10  ;;  %v1722_v23 = vmul.f32 %v2729_v53, %v1702_v4  ;;  %v1741_v24 = vadd.f32 %v2740_v62, %v1721_v6 }
  0xd7   : > { %v852_v27 = vadd.f32 %v806_v12, %v690_v17  ;;  %v853_v5 = vadd.f32 %v809_v13, %v2660_v25  ;;  %v880_v28 = vmul.f32 %v2555_v15, %v2654_v22  ;;  %v950_v30 = vrot.slane %v877_v8, 2 }
  0xd8   : > { %v574_v32 = vmax.f32 %v558_v33, 0.0  ;;  %v551_v34 = vadd.f32 %v2562_v16, %v531_v19  ;;  %v1742_v35 = vadd.f32 %v2740_v62, %v1722_v23  ;;  %v1757_v36 = vmax.f32 %v1741_v24, 0.0  ;;  %v2789_v19 = vld [vmem:[#allocation2 + $0xd0] sm:$0xff] }
  0xd9   : > { %v951_v38 = vrot.slane %v878_v18, 2  ;;  %v953_v39 = vrot.slane %v879_v26, 2  ;;  %v954_v40 = vrot.slane %v880_v28, 2  ;;  %v1047_v17 = vmul.f32 %v2609_v43, %v2652_v20  ;;  %v1379_v28 = vld [vmem:[#allocation2 + $0xc8] sm:$0x3] }
  0xda   : > { %643 = vst.msk [vmem:[#allocation2 + $0xf1] sm:$0xff] %vm578_vm1, %v574_v32  ;;  %v567_v25 = vmax.f32 %v551_v34, 0.0  ;;  %v1758_v22 = vmax.f32 %v1742_v35, 0.0  ;;  %v1048_v42 = vmul.f32 %v2609_v43, %v2760_v31  ;;  %v1088_v46 = vmul.f32 %v2612_v44, %v2652_v20  ;;  %v1381_v34 = vld [vmem:[#allocation2 + $0xd8] sm:$0x3] }
  0xdb   : > { %v514_v47 = vpop.f32.mrf.mxu2  ;;  %v952_v48 = vsel %vm925_vm5, %v950_v30, %v951_v38  ;;  %v955_v49 = vsel %vm925_vm5, %v953_v39, %v954_v40  ;;  %v1089_v54 = vmul.f32 %v2612_v44, %v1023_v37  ;;  %v1090_v55 = vmul.f32 %v2612_v44, %v2760_v31 }
  0xdc   : > { %636 = vst.msk [vmem:[#allocation2 + $0x61] sm:$0xff] %vm578_vm1, %v567_v25  ;;  %v539_v56 = vmul.f32 %v2550_v14, %v514_v47  ;;  %v1773_v57 = vpack.c.bf16 %v1758_v22, %v1757_v36  ;;  %v998_v58 = vadd.f32 %v952_v48, %v852_v27  ;;  %v999_v59 = vadd.f32 %v955_v49, %v853_v5 }
  0xdd   : > { %v497_v60 = vpop.f32.mrf.mxu0  ;;  %v1091_v61 = vmul.f32 %v2612_v44, %v1025_v41  ;;  %v1160_v63 = vrot.slane %v1088_v46, 1  ;;  %v1161_v0 = vrot.slane %v1089_v54, 1  ;;  %v1163_v1 = vrot.slane %v1090_v55, 1 }
  0xde   : > { %v559_v2 = vadd.f32 %v2562_v16, %v539_v56  ;;  %v532_v9 = vmul.f32 %v2550_v14, %v497_v60  ;;  %2124 = vmatmul.msk.bf16.vlgmr.msra.gmra.mxu1 %vm578_vm1, %v1773_v57  ;;  %v1063_v3 = vadd.f32 %v1047_v17, %v998_v58  ;;  %v1064_v4 = vadd.f32 %v1048_v42, %v999_v59 }
  0xdf   : > { %v1162_v6 = vsel %vm779_vm4, %v1160_v63, %v1161_v0  ;;  %v1164_v8 = vrot.slane %v1091_v61, 1  ;;  %v1233_v10 = vmul.f32 %v2618_v50, %v2652_v20  ;;  %v1234_v12 = vmul.f32 %v2618_v50, %v1023_v37 }
  0xe0   : > { %v575_v13 = vmax.f32 %v559_v2, 0.0  ;;  %v552_v18 = vadd.f32 %v2562_v16, %v532_v9  ;;  %v1208_v26 = vadd.f32 %v1162_v6, %v1063_v3  ;;  %v1235_v33 = vmul.f32 %v2618_v50, %v2760_v31 }
  0xe1   : > { %v1165_v23 = vsel %vm779_vm4, %v1163_v1, %v1164_v8  ;;  %v1236_v24 = vmul.f32 %v2618_v50, %v1025_v41  ;;  %v1305_v27 = vrot.slane %v1233_v10, 2  ;;  %v1306_v5 = vrot.slane %v1234_v12, 2  ;;  %v654_v8 = vld [vmem:[#allocation2 + $0x28] sm:$0x3] }
  0xe2   : > { %644 = vst.msk [vmem:[#allocation2 + $0x101] sm:$0xff] %vm578_vm1, %v575_v13  ;;  %v568_v20 = vmax.f32 %v552_v18, 0.0  ;;  %v1209_v30 = vadd.f32 %v1165_v23, %v1064_v4  ;;  %v1308_v32 = vrot.slane %v1235_v33, 2  ;;  %v1403_v35 = vmul.f32 %v2621_v51, %v2760_v31 }
  0xe3   : > { %v517_v36 = vpop.f32.mrf.mxu2  ;;  %v1307_v37 = vsel %vm925_vm5, %v1305_v27, %v1306_v5  ;;  %v1309_v38 = vrot.slane %v1236_v24, 2  ;;  %v1404_v39 = vmul.f32 %v2621_v51, %v2789_v19  ;;  %v1444_v40 = vmul.f32 %v2624_v52, %v2760_v31 }
  0xe4   : > { %637 = vst.msk [vmem:[#allocation2 + $0x71] sm:$0xff] %vm578_vm1, %v568_v20  ;;  %v540_v17 = vmul.f32 %v2550_v14, %v517_v36  ;;  %v1353_v25 = vadd.f32 %v1307_v37, %v1208_v26  ;;  %v1445_v22 = vmul.f32 %v2624_v52, %v1379_v28  ;;  %v1446_v41 = vmul.f32 %v2624_v52, %v2789_v19  ;;  %v656_v26 = vld [vmem:[#allocation2 + $0x38] sm:$0x3] }
  0xe5   : > { %v1310_v42 = vsel %vm925_vm5, %v1308_v32, %v1309_v38  ;;  %v1447_v46 = vmul.f32 %v2624_v52, %v1381_v34  ;;  %v1516_v47 = vrot.slane %v1444_v40, 1  ;;  %v1589_v48 = vmul.f32 %v2686_v45, %v2760_v31  ;;  %v499_v61 = vpop.f32.mrf.mxu0 }
  0xe6   : > { %v560_v49 = vadd.f32 %v2562_v16, %v540_v17  ;;  %v1354_v54 = vadd.f32 %v1310_v42, %v1209_v30  ;;  %v1419_v55 = vadd.f32 %v1403_v35, %v1353_v25  ;;  %v1517_v56 = vrot.slane %v1445_v22, 1 }
  0xe7   : > { %v1519_v57 = vrot.slane %v1446_v41, 1  ;;  %v1520_v58 = vrot.slane %v1447_v46, 1  ;;  %v1590_v59 = vmul.f32 %v2686_v45, %v1379_v28  ;;  %v1591_v60 = vmul.f32 %v2686_v45, %v2789_v19 }
  0xe8   : > { %v576_v63 = vmax.f32 %v560_v49, 0.0  ;;  %v1420_v0 = vadd.f32 %v1404_v39, %v1354_v54  ;;  %v1518_v1 = vsel %vm779_vm4, %v1516_v47, %v1517_v56  ;;  %v1592_v2 = vmul.f32 %v2686_v45, %v1381_v34 }
  0xe9   : > { %v1521_v9 = vsel %vm779_vm4, %v1519_v57, %v1520_v58  ;;  %v1564_v3 = vadd.f32 %v1518_v1, %v1419_v55  ;;  %v1661_v4 = vrot.slane %v1589_v48, 2  ;;  %v1662_v6 = vrot.slane %v1590_v59, 2 }
  0xea   : > { %645 = vst.msk [vmem:[#allocation2 + $0x111] sm:$0xff] %vm578_vm1, %v576_v63  ;;  %v1565_v10 = vadd.f32 %v1521_v9, %v1420_v0  ;;  %v1664_v12 = vrot.slane %v1591_v60, 2  ;;  %v1665_v13 = vrot.slane %v1592_v2, 2  ;;  %v533_v18 = vmul.f32 %v2550_v14, %v499_v61  ;;  %v1011_v60 = vld [vmem:[#allocation2 + $0x38] sm:$0x3] }
  0xeb   : > { %v1663_v33 = vsel %vm925_vm5, %v1661_v4, %v1662_v6  ;;  %v519_v23 = vpop.f32.mrf.mxu2  ;;  %v684_v24 = vmul.f32 %v2666_v29, %v2574_v21  ;;  %v685_v27 = vmul.f32 %v2708_v7, %v2574_v21  ;;  %v719_v5 = vmul.f32 %v2666_v29, %v2541_v11  ;;  %v1013_v2 = vld [vmem:[#allocation2 + $0x48] sm:$0x3] }
  0xec   : > { %v1666_v28 = vsel %vm925_vm5, %v1664_v12, %v1665_v13  ;;  %v1709_v20 = vadd.f32 %v1663_v33, %v1564_v3  ;;  %v553_v30 = vadd.f32 %v2562_v16, %v533_v18  ;;  %v541_v32 = vmul.f32 %v2550_v14, %v519_v23 }
  0xed   : > { %v1710_v34 = vadd.f32 %v1666_v28, %v1565_v10  ;;  %v720_v35 = vmul.f32 %v2541_v11, %v654_v8  ;;  %v721_v36 = vmul.f32 %v2708_v7, %v2541_v11  ;;  %v722_v37 = vmul.f32 %v2541_v11, %v656_v26 }
  0xee   : > { %v1729_v38 = vmul.f32 %v2729_v53, %v1709_v20  ;;  %v569_v39 = vmax.f32 %v553_v30, 0.0  ;;  %v561_v40 = vadd.f32 %v2562_v16, %v541_v32  ;;  %v786_v17 = vrot.slane %v719_v5, 1 }
  0xef   : > { %v1730_v25 = vmul.f32 %v2729_v53, %v1710_v34  ;;  %v787_v22 = vrot.slane %v720_v35, 1  ;;  %v789_v41 = vrot.slane %v721_v36, 1  ;;  %v790_v42 = vrot.slane %v722_v37, 1  ;;  %v2868_v35 = vld [vmem:[#allocation2 + $0x50] sm:$0xff] }
  0xf0   : > { %v1749_v14 = vadd.f32 %v2740_v62, %v1729_v38  ;;  %638 = vst.msk [vmem:[#allocation2 + $0x81] sm:$0xff] %vm578_vm1, %v569_v39  ;;  %v577_v46 = vmax.f32 %v561_v40, 0.0  ;;  %v865_v47 = vmul.f32 %v2666_v29, %v2555_v15  ;;  %v866_v48 = vmul.f32 %v2555_v15, %v654_v8  ;;  %v2848_v29 = vld [vmem:[#allocation2 + $0x40] sm:$0xff]  ;;  %v1367_v40 = vld [vmem:[#allocation2 + $0x48] sm:$0x3] }
  0xf1   : > { %v1750_v49 = vadd.f32 %v2740_v62, %v1730_v25  ;;  %v788_v16 = vsel %vm779_vm4, %v786_v17, %v787_v22  ;;  %v791_v54 = vsel %vm779_vm4, %v789_v41, %v790_v42  ;;  %v867_v55 = vmul.f32 %v2708_v7, %v2555_v15  ;;  %v1369_v41 = vld [vmem:[#allocation2 + $0x58] sm:$0x3] }
  0xf2   : > { %v1765_v56 = vmax.f32 %v1749_v14, 0.0  ;;  %646 = vst.msk [vmem:[#allocation2 + $0x121] sm:$0xff] %vm578_vm1, %v577_v46  ;;  %v846_v57 = vadd.f32 %v788_v16, %v684_v24  ;;  %v847_v58 = vadd.f32 %v791_v54, %v685_v27  ;;  %v868_v59 = vmul.f32 %v2555_v15, %v656_v26 }
  0xf3   : > { %v1766_v61 = vmax.f32 %v1750_v49, 0.0  ;;  %v932_v63 = vrot.slane %v865_v47, 2  ;;  %v933_v0 = vrot.slane %v866_v48, 2  ;;  %v935_v1 = vrot.slane %v867_v55, 2 }
  0xf4   : > { %v936_v9 = vrot.slane %v868_v59, 2  ;;  %v1041_v3 = vmul.f32 %v2708_v7, %v2609_v43  ;;  %v1042_v4 = vmul.f32 %v2609_v43, %v2848_v29  ;;  %v1076_v6 = vmul.f32 %v2708_v7, %v2612_v44 }
  0xf5   : > { %v1777_v8 = vpack.c.bf16 %v1766_v61, %v1765_v56  ;;  %v934_v10 = vsel %vm925_vm5, %v932_v63, %v933_v0  ;;  %v1077_v12 = vmul.f32 %v2612_v44, %v1011_v60  ;;  %v1078_v13 = vmul.f32 %v2612_v44, %v2848_v29 }
  0xf6   : > { %v937_v18 = vsel %vm925_vm5, %v935_v1, %v936_v9  ;;  %v992_v26 = vadd.f32 %v934_v10, %v846_v57  ;;  %v1079_v33 = vmul.f32 %v2612_v44, %v1013_v2  ;;  %v1142_v23 = vrot.slane %v1076_v6, 1  ;;  %v670_v10 = vld [vmem:[#allocation2 + $0xc8] sm:$0x3] }
  0xf7   : > { %2128 = vmatmul.msk.bf16.vlgmr.msra.gmra.mxu3 %vm578_vm1, %v1777_v8  ;;  %v993_v24 = vadd.f32 %v937_v18, %v847_v58  ;;  %v1143_v27 = vrot.slane %v1077_v12, 1  ;;  %v1145_v5 = vrot.slane %v1078_v13, 1  ;;  %v1221_v28 = vmul.f32 %v2708_v7, %v2618_v50 }
  0xf8   : > { %v1057_v20 = vadd.f32 %v1041_v3, %v992_v26  ;;  %v1146_v30 = vrot.slane %v1079_v33, 1  ;;  %v1222_v32 = vmul.f32 %v2618_v50, %v1011_v60  ;;  %v1223_v34 = vmul.f32 %v2618_v50, %v2848_v29  ;;  %v672_v33 = vld [vmem:[#allocation2 + $0xd8] sm:$0x3] }
  0xf9   : > { %v1058_v36 = vadd.f32 %v1042_v4, %v993_v24  ;;  %v1144_v37 = vsel %vm779_vm4, %v1142_v23, %v1143_v27  ;;  %v1224_v38 = vmul.f32 %v2618_v50, %v1013_v2  ;;  %v1287_v39 = vrot.slane %v1221_v28, 2 }
  0xfa   : > { %v1147_v17 = vsel %vm779_vm4, %v1145_v5, %v1146_v30  ;;  %v1202_v25 = vadd.f32 %v1144_v37, %v1057_v20  ;;  %v1288_v7 = vrot.slane %v1222_v32, 2  ;;  %v1290_v22 = vrot.slane %v1223_v34, 2 }
  0xfb   : > { %v1203_v42 = vadd.f32 %v1147_v17, %v1058_v36  ;;  %v1291_v14 = vrot.slane %v1224_v38, 2  ;;  %v1397_v46 = vmul.f32 %v2621_v51, %v2848_v29  ;;  %v1398_v47 = vmul.f32 %v2621_v51, %v2868_v35 }
  0xfc   : > { %v1289_v48 = vsel %vm925_vm5, %v1287_v39, %v1288_v7  ;;  %v1432_v49 = vmul.f32 %v2624_v52, %v2848_v29  ;;  %v1433_v16 = vmul.f32 %v2624_v52, %v1367_v40  ;;  %v1434_v54 = vmul.f32 %v2624_v52, %v2868_v35 }
  0xfd   : > { %v1292_v55 = vsel %vm925_vm5, %v1290_v22, %v1291_v14  ;;  %v1347_v56 = vadd.f32 %v1289_v48, %v1202_v25  ;;  %v1435_v57 = vmul.f32 %v2624_v52, %v1369_v41  ;;  %v1577_v58 = vmul.f32 %v2686_v45, %v2848_v29 }
  0xfe   : > { %v1348_v59 = vadd.f32 %v1292_v55, %v1203_v42  ;;  %v1498_v60 = vrot.slane %v1432_v49, 1  ;;  %v1499_v61 = vrot.slane %v1433_v16, 1  ;;  %v1501_v63 = vrot.slane %v1434_v54, 1 }
  0xff   : > { %v1413_v0 = vadd.f32 %v1397_v46, %v1347_v56  ;;  %v1502_v1 = vrot.slane %v1435_v57, 1  ;;  %v1578_v2 = vmul.f32 %v2686_v45, %v1367_v40  ;;  %v1579_v9 = vmul.f32 %v2686_v45, %v2868_v35 }
 0x100   : > { %v1414_v3 = vadd.f32 %v1398_v47, %v1348_v59  ;;  %v1500_v4 = vsel %vm779_vm4, %v1498_v60, %v1499_v61  ;;  %v1580_v6 = vmul.f32 %v2686_v45, %v1369_v41  ;;  %v1643_v8 = vrot.slane %v1577_v58, 2  ;;  %v1027_v60 = vld [vmem:[#allocation2 + $0xd8] sm:$0x3]  ;;  %v1029_v61 = vld [vmem:[#allocation2 + $0xe8] sm:$0x3] }
 0x101   : > { %v1503_v12 = vsel %vm779_vm4, %v1501_v63, %v1502_v1  ;;  %v1558_v13 = vadd.f32 %v1500_v4, %v1413_v0  ;;  %v1644_v18 = vrot.slane %v1578_v2, 2  ;;  %v1646_v26 = vrot.slane %v1579_v9, 2 }
 0x102   : > { %v1559_v23 = vadd.f32 %v1503_v12, %v1414_v3  ;;  %v1647_v24 = vrot.slane %v1580_v6, 2  ;;  %v692_v27 = vmul.f32 %v2760_v31, %v2574_v21  ;;  %v693_v5 = vmul.f32 %v2789_v19, %v2574_v21 }
 0x103   : > { %v1645_v28 = vsel %vm925_vm5, %v1643_v8, %v1644_v18  ;;  %v735_v20 = vmul.f32 %v2760_v31, %v2541_v11  ;;  %v736_v30 = vmul.f32 %v2541_v11, %v670_v10  ;;  %v737_v32 = vmul.f32 %v2789_v19, %v2541_v11 }
 0x104   : > { %v1648_v34 = vsel %vm925_vm5, %v1646_v26, %v1647_v24  ;;  %v1703_v36 = vadd.f32 %v1645_v28, %v1558_v13  ;;  %v738_v37 = vmul.f32 %v2541_v11, %v672_v33  ;;  %v881_v38 = vmul.f32 %v2760_v31, %v2555_v15  ;;  %v2914_v31 = vld [vmem:[#allocation2 + $0xe0] sm:$0xff]  ;;  %v2933_v24 = vld [vmem:[#allocation2 + $0xf0] sm:$0xff] }
 0x105   : > { %v1704_v39 = vadd.f32 %v1648_v34, %v1559_v23  ;;  %v810_v40 = vrot.slane %v735_v20, 1  ;;  %v811_v17 = vrot.slane %v736_v30, 1  ;;  %v813_v25 = vrot.slane %v737_v32, 1 }
 0x106   : > { %v1723_v7 = vmul.f32 %v2729_v53, %v1703_v36  ;;  %v814_v22 = vrot.slane %v738_v37, 1  ;;  %v882_v41 = vmul.f32 %v2555_v15, %v670_v10  ;;  %v883_v42 = vmul.f32 %v2789_v19, %v2555_v15  ;;  %v1383_v37 = vld [vmem:[#allocation2 + $0xe8] sm:$0x3] }
 0x107   : > { %v1724_v14 = vmul.f32 %v2729_v53, %v1704_v39  ;;  %v812_v46 = vsel %vm779_vm4, %v810_v40, %v811_v17  ;;  %v884_v47 = vmul.f32 %v2555_v15, %v672_v33  ;;  %v956_v48 = vrot.slane %v881_v38, 2  ;;  %v1385_v39 = vld [vmem:[#allocation2 + $0xf8] sm:$0x3] }
 0x108   : > { %v1743_v49 = vadd.f32 %v2740_v62, %v1723_v7  ;;  %v815_v16 = vsel %vm779_vm4, %v813_v25, %v814_v22  ;;  %v854_v54 = vadd.f32 %v812_v46, %v692_v27  ;;  %v957_v55 = vrot.slane %v882_v41, 2 }
 0x109   : > { %v1744_v56 = vadd.f32 %v2740_v62, %v1724_v14  ;;  %v855_v57 = vadd.f32 %v815_v16, %v693_v5  ;;  %v959_v58 = vrot.slane %v883_v42, 2  ;;  %v960_v59 = vrot.slane %v884_v47, 2 }
 0x10a   : > { %v1759_v63 = vmax.f32 %v1743_v49, 0.0  ;;  %v958_v0 = vsel %vm925_vm5, %v956_v48, %v957_v55  ;;  %v1049_v1 = vmul.f32 %v2789_v19, %v2609_v43  ;;  %v1050_v2 = vmul.f32 %v2609_v43, %v2914_v31 }
 0x10b   : > { %v1760_v9 = vmax.f32 %v1744_v56, 0.0  ;;  %v961_v3 = vsel %vm925_vm5, %v959_v58, %v960_v59  ;;  %v1000_v4 = vadd.f32 %v958_v0, %v854_v54  ;;  %v1092_v6 = vmul.f32 %v2789_v19, %v2612_v44 }
 0x10c   : > { %v1001_v8 = vadd.f32 %v961_v3, %v855_v57  ;;  %v1093_v10 = vmul.f32 %v2612_v44, %v1027_v60  ;;  %v1094_v12 = vmul.f32 %v2612_v44, %v2914_v31  ;;  %v1095_v13 = vmul.f32 %v2612_v44, %v1029_v61  ;;  %v658_v3 = vld [vmem:[#allocation2 + $0x48] sm:$0x3] }
 0x10d   : > { %v1774_v18 = vpack.c.bf16 %v1760_v9, %v1759_v63  ;;  %v1065_v26 = vadd.f32 %v1049_v1, %v1000_v4  ;;  %v1166_v33 = vrot.slane %v1092_v6, 1  ;;  %v1237_v23 = vmul.f32 %v2789_v19, %v2618_v50 }
 0x10e   : > { %v1066_v27 = vadd.f32 %v1050_v2, %v1001_v8  ;;  %v1167_v5 = vrot.slane %v1093_v10, 1  ;;  %v1169_v28 = vrot.slane %v1094_v12, 1  ;;  %v1170_v20 = vrot.slane %v1095_v13, 1  ;;  %v660_v12 = vld [vmem:[#allocation2 + $0x58] sm:$0x3] }
 0x10f   : > { %2125 = vmatmul.msk.bf16.gmra.mxu1 %vm578_vm1, %v1774_v18  ;;  %v1238_v30 = vmul.f32 %v2618_v50, %v1027_v60  ;;  %v1239_v32 = vmul.f32 %v2618_v50, %v2914_v31  ;;  %v1240_v34 = vmul.f32 %v2618_v50, %v1029_v61  ;;  %v1311_v36 = vrot.slane %v1237_v23, 2 }
 0x110   : > { %v1168_v38 = vsel %vm779_vm4, %v1166_v33, %v1167_v5  ;;  %v1171_v19 = vsel %vm779_vm4, %v1169_v28, %v1170_v20  ;;  %v1405_v40 = vmul.f32 %v2621_v51, %v2914_v31  ;;  %v1406_v17 = vmul.f32 %v2621_v51, %v2933_v24 }
 0x111   : > { %v1210_v25 = vadd.f32 %v1168_v38, %v1065_v26  ;;  %v1211_v7 = vadd.f32 %v1171_v19, %v1066_v27  ;;  %v1312_v22 = vrot.slane %v1238_v30, 2  ;;  %v1314_v41 = vrot.slane %v1239_v32, 2 }
 0x112   : > { %v1315_v42 = vrot.slane %v1240_v34, 2  ;;  %v1448_v14 = vmul.f32 %v2624_v52, %v2914_v31  ;;  %v1449_v46 = vmul.f32 %v2624_v52, %v1383_v37  ;;  %v1450_v47 = vmul.f32 %v2624_v52, %v2933_v24 }
 0x113   : > { %v1313_v48 = vsel %vm925_vm5, %v1311_v36, %v1312_v22  ;;  %v1451_v49 = vmul.f32 %v2624_v52, %v1385_v39  ;;  %v1593_v16 = vmul.f32 %v2686_v45, %v2914_v31  ;;  %v1594_v54 = vmul.f32 %v2686_v45, %v1383_v37 }
 0x114   : > { %v1316_v55 = vsel %vm925_vm5, %v1314_v41, %v1315_v42  ;;  %v1355_v56 = vadd.f32 %v1313_v48, %v1210_v25  ;;  %v1522_v57 = vrot.slane %v1448_v14, 1  ;;  %v1523_v58 = vrot.slane %v1449_v46, 1  ;;  %v1015_v48 = vld [vmem:[#allocation2 + $0x58] sm:$0x3] }
 0x115   : > { %v1356_v59 = vadd.f32 %v1316_v55, %v1211_v7  ;;  %v1525_v60 = vrot.slane %v1450_v47, 1  ;;  %v1526_v61 = vrot.slane %v1451_v49, 1  ;;  %v1595_v63 = vmul.f32 %v2686_v45, %v2933_v24 }
 0x116   : > { %v1421_v0 = vadd.f32 %v1405_v40, %v1355_v56  ;;  %v1524_v1 = vsel %vm779_vm4, %v1522_v57, %v1523_v58  ;;  %v1596_v2 = vmul.f32 %v2686_v45, %v1385_v39  ;;  %v1667_v9 = vrot.slane %v1593_v16, 2  ;;  %v2986_v56 = vld [vmem:[#allocation2 + $0x60] sm:$0xff]  ;;  %v1017_v57 = vld [vmem:[#allocation2 + $0x68] sm:$0x3] }
 0x117   : > { %v1422_v4 = vadd.f32 %v1406_v17, %v1356_v59  ;;  %v1527_v6 = vsel %vm779_vm4, %v1525_v60, %v1526_v61  ;;  %v1668_v8 = vrot.slane %v1594_v54, 2  ;;  %v1670_v10 = vrot.slane %v1595_v63, 2 }
 0x118   : > { %v1566_v13 = vadd.f32 %v1524_v1, %v1421_v0  ;;  %v1671_v18 = vrot.slane %v1596_v2, 2  ;;  %v686_v26 = vmul.f32 %v2848_v29, %v2574_v21  ;;  %v687_v33 = vmul.f32 %v2868_v35, %v2574_v21 }
 0x119   : > { %v1567_v23 = vadd.f32 %v1527_v6, %v1422_v4  ;;  %v1669_v27 = vsel %vm925_vm5, %v1667_v9, %v1668_v8  ;;  %v723_v5 = vmul.f32 %v2848_v29, %v2541_v11  ;;  %v724_v28 = vmul.f32 %v2541_v11, %v658_v3 }
 0x11a   : > { %v1672_v20 = vsel %vm925_vm5, %v1670_v10, %v1671_v18  ;;  %v1711_v30 = vadd.f32 %v1669_v27, %v1566_v13  ;;  %v725_v32 = vmul.f32 %v2868_v35, %v2541_v11  ;;  %v726_v34 = vmul.f32 %v2541_v11, %v660_v12 }
 0x11b   : > { %v1712_v36 = vadd.f32 %v1672_v20, %v1567_v23  ;;  %v792_v37 = vrot.slane %v723_v5, 1  ;;  %v793_v38 = vrot.slane %v724_v28, 1  ;;  %v869_v19 = vmul.f32 %v2848_v29, %v2555_v15 }
 0x11c   : > { %v1731_v39 = vmul.f32 %v2729_v53, %v1711_v30  ;;  %v795_v40 = vrot.slane %v725_v32, 1  ;;  %v796_v17 = vrot.slane %v726_v34, 1  ;;  %v870_v25 = vmul.f32 %v2555_v15, %v658_v3  ;;  %v1371_v30 = vld [vmem:[#allocation2 + $0x68] sm:$0x3]  ;;  %v3007_v32 = vld [vmem:[#allocation2 + $0x70] sm:$0xff] }
 0x11d   : > { %v1732_v7 = vmul.f32 %v2729_v53, %v1712_v36  ;;  %v794_v22 = vsel %vm779_vm4, %v792_v37, %v793_v38  ;;  %v871_v41 = vmul.f32 %v2868_v35, %v2555_v15  ;;  %v872_v42 = vmul.f32 %v2555_v15, %v660_v12 }
 0x11e   : > { %v1751_v14 = vadd.f32 %v2740_v62, %v1731_v39  ;;  %v797_v46 = vsel %vm779_vm4, %v795_v40, %v796_v17  ;;  %v848_v29 = vadd.f32 %v794_v22, %v686_v26  ;;  %v938_v47 = vrot.slane %v869_v19, 2 }
 0x11f   : > { %v1752_v49 = vadd.f32 %v2740_v62, %v1732_v7  ;;  %v849_v16 = vadd.f32 %v797_v46, %v687_v33  ;;  %v939_v54 = vrot.slane %v870_v25, 2  ;;  %v941_v55 = vrot.slane %v871_v41, 2 }
 0x120   : > { %v1767_v58 = vmax.f32 %v1751_v14, 0.0  ;;  %v942_v59 = vrot.slane %v872_v42, 2  ;;  %v1043_v60 = vmul.f32 %v2868_v35, %v2609_v43  ;;  %v1044_v61 = vmul.f32 %v2609_v43, %v2986_v56 }
 0x121   : > { %v1768_v63 = vmax.f32 %v1752_v49, 0.0  ;;  %v940_v0 = vsel %vm925_vm5, %v938_v47, %v939_v54  ;;  %v1080_v1 = vmul.f32 %v2868_v35, %v2612_v44  ;;  %v1081_v2 = vmul.f32 %v2612_v44, %v1015_v48 }
 0x122   : > { %v943_v9 = vsel %vm925_vm5, %v941_v55, %v942_v59  ;;  %v994_v3 = vadd.f32 %v940_v0, %v848_v29  ;;  %v1082_v4 = vmul.f32 %v2612_v44, %v2986_v56  ;;  %v1083_v6 = vmul.f32 %v2612_v44, %v1017_v57 }
 0x123   : > { %v1778_v8 = vpack.c.bf16 %v1768_v63, %v1767_v58  ;;  %v995_v10 = vadd.f32 %v943_v9, %v849_v16  ;;  %v1148_v12 = vrot.slane %v1080_v1, 1  ;;  %v1149_v13 = vrot.slane %v1081_v2, 1 }
 0x124   : > { %v1059_v18 = vadd.f32 %v1043_v60, %v994_v3  ;;  %v1151_v26 = vrot.slane %v1082_v4, 1  ;;  %v1152_v33 = vrot.slane %v1083_v6, 1  ;;  %v1225_v23 = vmul.f32 %v2868_v35, %v2618_v50  ;;  %v1373_v35 = vld [vmem:[#allocation2 + $0x78] sm:$0x3]  ;;  %v674_v3 = vld [vmem:[#allocation2 + $0xe8] sm:$0x3] }
 0x125   : > { %2129 = vmatmul.msk.bf16.gmra.mxu3 %vm578_vm1, %v1778_v8  ;;  %v1060_v27 = vadd.f32 %v1044_v61, %v995_v10  ;;  %v1150_v5 = vsel %vm779_vm4, %v1148_v12, %v1149_v13  ;;  %v1226_v28 = vmul.f32 %v2618_v50, %v1015_v48  ;;  %v1227_v20 = vmul.f32 %v2618_v50, %v2986_v56  ;;  %v676_v10 = vld [vmem:[#allocation2 + $0xf8] sm:$0x3] }
 0x126   : > { %v1153_v34 = vsel %vm779_vm4, %v1151_v26, %v1152_v33  ;;  %v1204_v36 = vadd.f32 %v1150_v5, %v1059_v18  ;;  %v1228_v37 = vmul.f32 %v2618_v50, %v1017_v57  ;;  %v1293_v38 = vrot.slane %v1225_v23, 2 }
 0x127   : > { %v1205_v19 = vadd.f32 %v1153_v34, %v1060_v27  ;;  %v1294_v39 = vrot.slane %v1226_v28, 2  ;;  %v1296_v40 = vrot.slane %v1227_v20, 2  ;;  %v1399_v17 = vmul.f32 %v2621_v51, %v2986_v56 }
 0x128   : > { %v1297_v25 = vrot.slane %v1228_v37, 2  ;;  %v1400_v7 = vmul.f32 %v2621_v51, %v3007_v32  ;;  %v1436_v22 = vmul.f32 %v2624_v52, %v2986_v56  ;;  %v1437_v41 = vmul.f32 %v2624_v52, %v1371_v30 }
 0x129   : > { %v1295_v42 = vsel %vm925_vm5, %v1293_v38, %v1294_v39  ;;  %v1438_v14 = vmul.f32 %v2624_v52, %v3007_v32  ;;  %v1439_v46 = vmul.f32 %v2624_v52, %v1373_v35  ;;  %v1581_v29 = vmul.f32 %v2686_v45, %v2986_v56 }
 0x12a   : > { %v1298_v47 = vsel %vm925_vm5, %v1296_v40, %v1297_v25  ;;  %v1349_v48 = vadd.f32 %v1295_v42, %v1204_v36  ;;  %v1504_v49 = vrot.slane %v1436_v22, 1  ;;  %v1505_v16 = vrot.slane %v1437_v41, 1  ;;  %v3053_v41 = vld [vmem:[#allocation2 + $0x100] sm:$0xff] }
 0x12b   : > { %v1350_v54 = vadd.f32 %v1298_v47, %v1205_v19  ;;  %v1507_v55 = vrot.slane %v1438_v14, 1  ;;  %v1508_v57 = vrot.slane %v1439_v46, 1  ;;  %v1582_v58 = vmul.f32 %v2686_v45, %v1371_v30 }
 0x12c   : > { %v1415_v59 = vadd.f32 %v1399_v17, %v1349_v48  ;;  %v1506_v60 = vsel %vm779_vm4, %v1504_v49, %v1505_v16  ;;  %v1583_v61 = vmul.f32 %v2686_v45, %v3007_v32  ;;  %v1584_v63 = vmul.f32 %v2686_v45, %v1373_v35 }
 0x12d   : > { %v1416_v0 = vadd.f32 %v1400_v7, %v1350_v54  ;;  %v1509_v1 = vsel %vm779_vm4, %v1507_v55, %v1508_v57  ;;  %v1649_v2 = vrot.slane %v1581_v29, 2  ;;  %v1650_v9 = vrot.slane %v1582_v58, 2  ;;  %v1031_v29 = vld [vmem:[#allocation2 + $0xf8] sm:$0x3]  ;;  %v1033_v54 = vld [vmem:[#allocation2 + $0x108] sm:$0x3] }
 0x12e   : > { %v1560_v4 = vadd.f32 %v1506_v60, %v1415_v59  ;;  %v1652_v6 = vrot.slane %v1583_v61, 2  ;;  %v1653_v8 = vrot.slane %v1584_v63, 2  ;;  %v694_v12 = vmul.f32 %v2914_v31, %v2574_v21 }
 0x12f   : > { %v1561_v13 = vadd.f32 %v1509_v1, %v1416_v0  ;;  %v1651_v18 = vsel %vm925_vm5, %v1649_v2, %v1650_v9  ;;  %v695_v26 = vmul.f32 %v2933_v24, %v2574_v21  ;;  %v739_v45 = vmul.f32 %v2914_v31, %v2541_v11 }
 0x130   : > { %v1654_v33 = vsel %vm925_vm5, %v1652_v6, %v1653_v8  ;;  %v1705_v23 = vadd.f32 %v1651_v18, %v1560_v4  ;;  %v740_v27 = vmul.f32 %v2541_v11, %v674_v3  ;;  %v741_v5 = vmul.f32 %v2933_v24, %v2541_v11 }
 0x131   : > { %v1706_v28 = vadd.f32 %v1654_v33, %v1561_v13  ;;  %v742_v20 = vmul.f32 %v2541_v11, %v676_v10  ;;  %v816_v30 = vrot.slane %v739_v45, 1  ;;  %v885_v34 = vmul.f32 %v2914_v31, %v2555_v15 }
 0x132   : > { %v1725_v36 = vmul.f32 %v2729_v53, %v1705_v23  ;;  %v817_v37 = vrot.slane %v740_v27, 1  ;;  %v819_v38 = vrot.slane %v741_v5, 1  ;;  %v886_v35 = vmul.f32 %v2555_v15, %v674_v3  ;;  %v1387_v27 = vld [vmem:[#allocation2 + $0x108] sm:$0x3]  ;;  %v1389_v5 = vld [vmem:[#allocation2 + $0x118] sm:$0x3] }
 0x133   : > { %v1726_v19 = vmul.f32 %v2729_v53, %v1706_v28  ;;  %v820_v39 = vrot.slane %v742_v20, 1  ;;  %v887_v40 = vmul.f32 %v2933_v24, %v2555_v15  ;;  %v888_v17 = vmul.f32 %v2555_v15, %v676_v10 }
 0x134   : > { %v1745_v25 = vadd.f32 %v2740_v62, %v1725_v36  ;;  %v818_v7 = vsel %vm779_vm4, %v816_v30, %v817_v37  ;;  %v962_v22 = vrot.slane %v885_v34, 2  ;;  %v963_v31 = vrot.slane %v886_v35, 2 }
 0x135   : > { %v1746_v42 = vadd.f32 %v2740_v62, %v1726_v19  ;;  %v821_v14 = vsel %vm779_vm4, %v819_v38, %v820_v39  ;;  %v856_v46 = vadd.f32 %v818_v7, %v694_v12  ;;  %v965_v53 = vrot.slane %v887_v40, 2 }
 0x136   : > { %v1761_v47 = vmax.f32 %v1745_v25, 0.0  ;;  %v857_v48 = vadd.f32 %v821_v14, %v695_v26  ;;  %v964_v49 = vsel %vm925_vm5, %v962_v22, %v963_v31  ;;  %v966_v16 = vrot.slane %v888_v17, 2  ;;  %v3075_v26 = vld [vmem:[#allocation2 + $0x110] sm:$0xff]  ;;  %v3095_v31 = vld [vmem:[%s3358_s4 + $0x8] ss:$0 sm:$0xff] }
 0x137   : > { %v1762_v55 = vmax.f32 %v1746_v42, 0.0  ;;  %v1002_v57 = vadd.f32 %v964_v49, %v856_v46  ;;  %v1051_v58 = vmul.f32 %v2933_v24, %v2609_v43  ;;  %v1052_v59 = vmul.f32 %v2609_v43, %v3053_v41 }
 0x138   : > { %v967_v62 = vsel %vm925_vm5, %v965_v53, %v966_v16  ;;  %v1096_v60 = vmul.f32 %v2933_v24, %v2612_v44  ;;  %v1097_v61 = vmul.f32 %v2612_v44, %v1031_v29  ;;  %v1098_v63 = vmul.f32 %v2612_v44, %v3053_v41 }
 0x139   : > { %v1775_v0 = vpack.c.bf16 %v1762_v55, %v1761_v47  ;;  %v1003_v1 = vadd.f32 %v967_v62, %v857_v48  ;;  %v1067_v2 = vadd.f32 %v1051_v58, %v1002_v57  ;;  %v1099_v9 = vmul.f32 %v2612_v44, %v1033_v54 }
 0x13a   : > { %v1172_v3 = vrot.slane %v1096_v60, 1  ;;  %v1173_v4 = vrot.slane %v1097_v61, 1  ;;  %v1175_v6 = vrot.slane %v1098_v63, 1  ;;  %v1241_v8 = vmul.f32 %v2933_v24, %v2618_v50 }
 0x13b   : > { %2126 = vmatmul.msk.bf16.gmra.mxu1 %vm578_vm1, %v1775_v0  ;;  %v1068_v10 = vadd.f32 %v1052_v59, %v1003_v1  ;;  %v1176_v12 = vrot.slane %v1099_v9, 1  ;;  %v1242_v13 = vmul.f32 %v2618_v50, %v1031_v29  ;;  %v1243_v18 = vmul.f32 %v2618_v50, %v3053_v41  ;;  %v662_v59 = vld [vmem:[#allocation2 + $0x68] sm:$0x3]  ;;  %v664_v0 = vld [vmem:[#allocation2 + $0x78] sm:$0x3] }
 0x13c   : > { %v1174_v45 = vsel %vm779_vm4, %v1172_v3, %v1173_v4  ;;  %v1244_v33 = vmul.f32 %v2618_v50, %v1033_v54  ;;  %v1317_v23 = vrot.slane %v1241_v8, 2  ;;  %v1407_v24 = vmul.f32 %v2621_v51, %v3053_v41 }
 0x13d   : > { %v1177_v28 = vsel %vm779_vm4, %v1175_v6, %v1176_v12  ;;  %v1212_v20 = vadd.f32 %v1174_v45, %v1067_v2  ;;  %v1318_v30 = vrot.slane %v1242_v13, 2  ;;  %v1320_v34 = vrot.slane %v1243_v18, 2 }
 0x13e   : > { %v1213_v36 = vadd.f32 %v1177_v28, %v1068_v10  ;;  %v1321_v37 = vrot.slane %v1244_v33, 2  ;;  %v1408_v38 = vmul.f32 %v2621_v51, %v3075_v26  ;;  %v1452_v35 = vmul.f32 %v2624_v52, %v3053_v41 }
 0x13f   : > { %v1319_v19 = vsel %vm925_vm5, %v1317_v23, %v1318_v30  ;;  %v1453_v39 = vmul.f32 %v2624_v52, %v1387_v27  ;;  %v1454_v40 = vmul.f32 %v2624_v52, %v3075_v26  ;;  %v1455_v17 = vmul.f32 %v2624_v52, %v1389_v5 }
 0x140   : > { %v1322_v25 = vsel %vm925_vm5, %v1320_v34, %v1321_v37  ;;  %v1357_v7 = vadd.f32 %v1319_v19, %v1212_v20  ;;  %v1528_v22 = vrot.slane %v1452_v35, 1  ;;  %v1597_v42 = vmul.f32 %v3095_v31, %v3053_v41  ;;  %v3134_v35 = vld [vmem:[%s3360_s6] ss:$0 sm:$0xff] }
 0x141   : > { %v1358_v14 = vadd.f32 %v1322_v25, %v1213_v36  ;;  %v1529_v46 = vrot.slane %v1453_v39, 1  ;;  %v1531_v53 = vrot.slane %v1454_v40, 1  ;;  %v1532_v29 = vrot.slane %v1455_v17, 1  ;;  %v1019_v25 = vld [vmem:[#allocation2 + $0x78] sm:$0x3] }
 0x142   : > { %v1423_v47 = vadd.f32 %v1407_v24, %v1357_v7  ;;  %v1598_v48 = vmul.f32 %v3095_v31, %v1387_v27  ;;  %v1599_v49 = vmul.f32 %v3095_v31, %v3075_v26  ;;  %v1600_v16 = vmul.f32 %v3095_v31, %v1389_v5  ;;  %v3123_v24 = vld [vmem:[%s3359_s5] ss:$0 sm:$0xff] }
 0x143   : > { %v1424_v54 = vadd.f32 %v1408_v38, %v1358_v14  ;;  %v1530_v55 = vsel %vm779_vm4, %v1528_v22, %v1529_v46  ;;  %v1533_v57 = vsel %vm779_vm4, %v1531_v53, %v1532_v29  ;;  %v1673_v58 = vrot.slane %v1597_v42, 2  ;;  %v1020_v7 = vld [vmem:[#allocation2 + $0x80] sm:$0xff] }
 0x144   : > { %v1568_v62 = vadd.f32 %v1530_v55, %v1423_v47  ;;  %v1674_v60 = vrot.slane %v1598_v48, 2  ;;  %v1676_v61 = vrot.slane %v1599_v49, 2  ;;  %v1677_v63 = vrot.slane %v1600_v16, 2  ;;  %v1021_v48 = vld [vmem:[#allocation2 + $0x88] sm:$0x3] }
 0x145   : > { %v1569_v1 = vadd.f32 %v1533_v57, %v1424_v54  ;;  %v688_v2 = vmul.f32 %v2986_v56, %v2574_v21  ;;  %v689_v9 = vmul.f32 %v3007_v32, %v2574_v21  ;;  %v727_v3 = vmul.f32 %v2986_v56, %v2541_v11 }
 0x146   : > { %v1675_v4 = vsel %vm925_vm5, %v1673_v58, %v1674_v60  ;;  %v1678_v6 = vsel %vm925_vm5, %v1676_v61, %v1677_v63  ;;  %v728_v8 = vmul.f32 %v2541_v11, %v662_v59  ;;  %v729_v10 = vmul.f32 %v3007_v32, %v2541_v11 }
 0x147   : > { %v1713_v12 = vadd.f32 %v1675_v4, %v1568_v62  ;;  %v1714_v13 = vadd.f32 %v1678_v6, %v1569_v1  ;;  %v730_v18 = vmul.f32 %v2541_v11, %v664_v0  ;;  %v798_v45 = vrot.slane %v727_v3, 1  ;;  %v1376_v6 = vld [vmem:[#allocation2 + $0x90] sm:$0xff] }
 0x148   : > { %v799_v33 = vrot.slane %v728_v8, 1  ;;  %v801_v23 = vrot.slane %v729_v10, 1  ;;  %v873_v27 = vmul.f32 %v2986_v56, %v2555_v15  ;;  %v874_v5 = vmul.f32 %v2555_v15, %v662_v59 }
 0x149   : > { %v1733_v28 = vmul.f32 %v3123_v24, %v1713_v12  ;;  %v1734_v20 = vmul.f32 %v3123_v24, %v1714_v13  ;;  %v802_v30 = vrot.slane %v730_v18, 1  ;;  %v875_v34 = vmul.f32 %v3007_v32, %v2555_v15  ;;  %v1375_v18 = vld [vmem:[#allocation2 + $0x88] sm:$0x3] }
 0x14a   : > { %v800_v36 = vsel %vm779_vm4, %v798_v45, %v799_v33  ;;  %v876_v37 = vmul.f32 %v2555_v15, %v664_v0  ;;  %v944_v56 = vrot.slane %v873_v27, 2  ;;  %v945_v38 = vrot.slane %v874_v5, 2 }
 0x14b   : > { %v1753_v19 = vadd.f32 %v3134_v35, %v1733_v28  ;;  %v1754_v39 = vadd.f32 %v3134_v35, %v1734_v20  ;;  %v803_v40 = vsel %vm779_vm4, %v801_v23, %v802_v30  ;;  %v850_v17 = vadd.f32 %v800_v36, %v688_v2 }
 0x14c   : > { %v851_v22 = vadd.f32 %v803_v40, %v689_v9  ;;  %v946_v42 = vsel %vm925_vm5, %v944_v56, %v945_v38  ;;  %v947_v14 = vrot.slane %v875_v34, 2  ;;  %v948_v46 = vrot.slane %v876_v37, 2 }
 0x14d   : > { %v1769_v53 = vmax.f32 %v1753_v19, 0.0  ;;  %v1770_v29 = vmax.f32 %v1754_v39, 0.0  ;;  %v996_v47 = vadd.f32 %v946_v42, %v850_v17  ;;  %v1045_v49 = vmul.f32 %v3007_v32, %v2609_v43 }
 0x14e   : > { %v949_v16 = vsel %vm925_vm5, %v947_v14, %v948_v46  ;;  %v1046_v54 = vmul.f32 %v2609_v43, %v1020_v7  ;;  %v1084_v55 = vmul.f32 %v3007_v32, %v2612_v44  ;;  %v1085_v57 = vmul.f32 %v2612_v44, %v1019_v25 }
 0x14f   : > { %v1779_v58 = vpack.c.bf16 %v1770_v29, %v1769_v53  ;;  %v997_v59 = vadd.f32 %v949_v16, %v851_v22  ;;  %v1061_v62 = vadd.f32 %v1045_v49, %v996_v47  ;;  %v1086_v60 = vmul.f32 %v2612_v44, %v1020_v7 }
 0x150   : > { %v1087_v61 = vmul.f32 %v2612_v44, %v1021_v48  ;;  %v1154_v63 = vrot.slane %v1084_v55, 1  ;;  %v1155_v0 = vrot.slane %v1085_v57, 1  ;;  %v1229_v1 = vmul.f32 %v3007_v32, %v2618_v50  ;;  %v1377_v32 = vld [vmem:[#allocation2 + $0x98] sm:$0x3] }
 0x151   : > { %2130 = vmatmul.msk.bf16.gmra.mxu3 %vm578_vm1, %v1779_v58  ;;  %v1062_v2 = vadd.f32 %v1046_v54, %v997_v59  ;;  %v1157_v9 = vrot.slane %v1086_v60, 1  ;;  %v1230_v3 = vmul.f32 %v2618_v50, %v1019_v25  ;;  %v1231_v4 = vmul.f32 %v2618_v50, %v1020_v7  ;;  %v678_v54 = vld [vmem:[#allocation2 + $0x108] sm:$0x3] }
 0x152   : > { %v1156_v8 = vsel %vm779_vm4, %v1154_v63, %v1155_v0  ;;  %v1158_v10 = vrot.slane %v1087_v61, 1  ;;  %v1232_v12 = vmul.f32 %v2618_v50, %v1021_v48  ;;  %v1299_v13 = vrot.slane %v1229_v1, 2 }
 0x153   : > { %v1206_v45 = vadd.f32 %v1156_v8, %v1061_v62  ;;  %v1300_v33 = vrot.slane %v1230_v3, 2  ;;  %v1302_v23 = vrot.slane %v1231_v4, 2  ;;  %v1401_v27 = vmul.f32 %v2621_v51, %v1020_v7  ;;  %v680_v62 = vld [vmem:[#allocation2 + $0x118] sm:$0x3] }
 0x154   : > { %v1159_v5 = vsel %vm779_vm4, %v1157_v9, %v1158_v10  ;;  %v1303_v28 = vrot.slane %v1232_v12, 2  ;;  %v1402_v20 = vmul.f32 %v2621_v51, %v1376_v6  ;;  %v1440_v30 = vmul.f32 %v2624_v52, %v1020_v7 }
 0x155   : > { %v1207_v34 = vadd.f32 %v1159_v5, %v1062_v2  ;;  %v1301_v36 = vsel %vm925_vm5, %v1299_v13, %v1300_v33  ;;  %v1441_v37 = vmul.f32 %v2624_v52, %v1375_v18  ;;  %v1442_v56 = vmul.f32 %v2624_v52, %v1376_v6 }
 0x156   : > { %v1304_v38 = vsel %vm925_vm5, %v1302_v23, %v1303_v28  ;;  %v1351_v19 = vadd.f32 %v1301_v36, %v1206_v45  ;;  %v1443_v39 = vmul.f32 %v2624_v52, %v1377_v32  ;;  %v1510_v40 = vrot.slane %v1440_v30, 1 }
 0x157   : > { %v1352_v17 = vadd.f32 %v1304_v38, %v1207_v34  ;;  %v1511_v25 = vrot.slane %v1441_v37, 1  ;;  %v1513_v22 = vrot.slane %v1442_v56, 1  ;;  %v1585_v42 = vmul.f32 %v3095_v31, %v1020_v7 }
 0x158   : > { %v1417_v14 = vadd.f32 %v1401_v27, %v1351_v19  ;;  %v1514_v46 = vrot.slane %v1443_v39, 1  ;;  %v1586_v53 = vmul.f32 %v3095_v31, %v1375_v18  ;;  %v1587_v29 = vmul.f32 %v3095_v31, %v1376_v6  ;;  %v1035_v19 = vld [vmem:[#allocation2 + $0x118] sm:$0x3]  ;;  %v1037_v39 = vld [vmem:[#allocation2 + $0x128] sm:$0x3] }
 0x159   : > { %v1418_v47 = vadd.f32 %v1402_v20, %v1352_v17  ;;  %v1512_v48 = vsel %vm779_vm4, %v1510_v40, %v1511_v25  ;;  %v1588_v49 = vmul.f32 %v3095_v31, %v1377_v32  ;;  %v1655_v16 = vrot.slane %v1585_v42, 2 }
 0x15a   : > { %v1515_v55 = vsel %vm779_vm4, %v1513_v22, %v1514_v46  ;;  %v1562_v57 = vadd.f32 %v1512_v48, %v1417_v14  ;;  %v1656_v58 = vrot.slane %v1586_v53, 2  ;;  %v1658_v59 = vrot.slane %v1587_v29, 2 }
 0x15b   : > { %v1563_v7 = vadd.f32 %v1515_v55, %v1418_v47  ;;  %v1659_v60 = vrot.slane %v1588_v49, 2  ;;  %v696_v61 = vmul.f32 %v3053_v41, %v2574_v21  ;;  %v697_v63 = vmul.f32 %v3075_v26, %v2574_v21  ;;  %v1819_v49 = vpop.f32.mrf.mxu1 }
 0x15c   : > { %v1657_v0 = vsel %vm925_vm5, %v1655_v16, %v1656_v58  ;;  %v743_v1 = vmul.f32 %v3053_v41, %v2541_v11  ;;  %v744_v2 = vmul.f32 %v2541_v11, %v678_v54  ;;  %v745_v9 = vmul.f32 %v3075_v26, %v2541_v11 }
 0x15d   : > { %v1660_v3 = vsel %vm925_vm5, %v1658_v59, %v1659_v60  ;;  %v1707_v4 = vadd.f32 %v1657_v0, %v1562_v57  ;;  %v746_v6 = vmul.f32 %v2541_v11, %v680_v62  ;;  %v889_v8 = vmul.f32 %v3053_v41, %v2555_v15  ;;  %v1036_v41 = vld [vmem:[#allocation2 + $0x120] sm:$0xff]  ;;  %v1392_v57 = vld [vmem:[#allocation2 + $0x130] sm:$0xff]  ;;  %v1391_v0 = vld [vmem:[#allocation2 + $0x128] sm:$0x3] }
 0x15e   : > { %v1708_v10 = vadd.f32 %v1660_v3, %v1563_v7  ;;  %v822_v21 = vrot.slane %v743_v1, 1  ;;  %v823_v12 = vrot.slane %v744_v2, 1  ;;  %v825_v13 = vrot.slane %v745_v9, 1 }
 0x15f   : > { %v1727_v18 = vmul.f32 %v3123_v24, %v1707_v4  ;;  %v826_v45 = vrot.slane %v746_v6, 1  ;;  %v890_v33 = vmul.f32 %v2555_v15, %v678_v54  ;;  %v891_v23 = vmul.f32 %v3075_v26, %v2555_v15 }
 0x160   : > { %v1728_v32 = vmul.f32 %v3123_v24, %v1708_v10  ;;  %v824_v27 = vsel %vm779_vm4, %v822_v21, %v823_v12  ;;  %v892_v11 = vmul.f32 %v2555_v15, %v680_v62  ;;  %v968_v5 = vrot.slane %v889_v8, 2 }
 0x161   : > { %v1747_v28 = vadd.f32 %v3134_v35, %v1727_v18  ;;  %v827_v20 = vsel %vm779_vm4, %v825_v13, %v826_v45  ;;  %v858_v30 = vadd.f32 %v824_v27, %v696_v61  ;;  %v969_v34 = vrot.slane %v890_v33, 2 }
 0x162   : > { %v1748_v36 = vadd.f32 %v3134_v35, %v1728_v32  ;;  %v859_v37 = vadd.f32 %v827_v20, %v697_v63  ;;  %v971_v56 = vrot.slane %v891_v23, 2  ;;  %v972_v38 = vrot.slane %v892_v11, 2 }
 0x163   : > { %v1763_v40 = vmax.f32 %v1747_v28, 0.0  ;;  %v970_v17 = vsel %vm925_vm5, %v968_v5, %v969_v34  ;;  %v1053_v15 = vmul.f32 %v3075_v26, %v2609_v43  ;;  %v1054_v25 = vmul.f32 %v2609_v43, %v1036_v41  ;;  %v3226_v5 = vld [vmem:[%s3362_s8] ss:$0 sm:$0xff] }
 0x164   : > { %v1764_v22 = vmax.f32 %v1748_v36, 0.0  ;;  %v973_v42 = vsel %vm925_vm5, %v971_v56, %v972_v38  ;;  %v1004_v14 = vadd.f32 %v970_v17, %v858_v30  ;;  %v1100_v46 = vmul.f32 %v3075_v26, %v2612_v44  ;;  %v3235_v38 = vld [vmem:[%s3363_s9] ss:$0 sm:$0xff] }
 0x165   : > { %v1005_v53 = vadd.f32 %v973_v42, %v859_v37  ;;  %v1101_v29 = vmul.f32 %v2612_v44, %v1035_v19  ;;  %v1102_v47 = vmul.f32 %v2612_v44, %v1036_v41  ;;  %v1103_v48 = vmul.f32 %v2612_v44, %v1037_v39 }
 0x166   : > { %v1776_v16 = vpack.c.bf16 %v1764_v22, %v1763_v40  ;;  %v1069_v54 = vadd.f32 %v1053_v15, %v1004_v14  ;;  %v1178_v55 = vrot.slane %v1100_v46, 1  ;;  %v1245_v43 = vmul.f32 %v3075_v26, %v2618_v50  ;;  %v1393_v26 = vld [vmem:[#allocation2 + $0x138] sm:$0x3] }
 0x167   : > { %v1070_v58 = vadd.f32 %v1054_v25, %v1005_v53  ;;  %v1179_v59 = vrot.slane %v1101_v29, 1  ;;  %v1181_v62 = vrot.slane %v1102_v47, 1  ;;  %v1182_v7 = vrot.slane %v1103_v48, 1 }
 0x168   : > { %2127 = vmatmul.msk.bf16.gmra.mxu1 %vm578_vm1, %v1776_v16  ;;  %v1246_v60 = vmul.f32 %v2618_v50, %v1035_v19  ;;  %v1247_v61 = vmul.f32 %v2618_v50, %v1036_v41  ;;  %v1248_v44 = vmul.f32 %v2618_v50, %v1037_v39  ;;  %v1323_v63 = vrot.slane %v1245_v43, 2  ;;  %v1821_v19 = vpop.f32.mrf.mxu1 }
 0x169   : > { %v1180_v1 = vsel %vm779_vm4, %v1178_v55, %v1179_v59  ;;  %v1183_v2 = vsel %vm779_vm4, %v1181_v62, %v1182_v7  ;;  %v1409_v9 = vmul.f32 %v2621_v51, %v1036_v41  ;;  %v1410_v3 = vmul.f32 %v2621_v51, %v1392_v57 }
 0x16a   : > { %v1214_v4 = vadd.f32 %v1180_v1, %v1069_v54  ;;  %v1215_v6 = vadd.f32 %v1183_v2, %v1070_v58  ;;  %v1324_v8 = vrot.slane %v1246_v60, 2  ;;  %v1326_v10 = vrot.slane %v1247_v61, 2  ;;  %v392_v61 = vld [vmem:[%s2464_s28 + $0x20] sm:$0xff]  }
 0x16b   : > { %v1327_v21 = vrot.slane %v1248_v44, 2  ;;  %v1456_v12 = vmul.f32 %v2624_v52, %v1036_v41  ;;  %v1457_v50 = vmul.f32 %v2624_v52, %v1391_v0  ;;  %v1458_v13 = vmul.f32 %v2624_v52, %v1392_v57 }
 0x16c   : > { %v1325_v18 = vsel %vm925_vm5, %v1323_v63, %v1324_v8  ;;  %v1459_v45 = vmul.f32 %v2624_v52, %v1393_v26  ;;  %v1601_v33 = vmul.f32 %v3095_v31, %v1036_v41  ;;  %v1602_v51 = vmul.f32 %v3095_v31, %v1391_v0  ;;  %v384_v52 = vld [vmem:[%s2464_s28] sm:$0xff]  }
 0x16d   : > { %v1328_v23 = vsel %vm925_vm5, %v1326_v10, %v1327_v21  ;;  %v1359_v32 = vadd.f32 %v1325_v18, %v1214_v4  ;;  %v1534_v27 = vrot.slane %v1456_v12, 1  ;;  %v1535_v11 = vrot.slane %v1457_v50, 1  ;;  %v386_v18 = vld [vmem:[%s2464_s28 + $0x8] sm:$0xff]  }
 0x16e   : > { %v1360_v28 = vadd.f32 %v1328_v23, %v1215_v6  ;;  %v1537_v20 = vrot.slane %v1458_v13, 1  ;;  %v1538_v30 = vrot.slane %v1459_v45, 1  ;;  %v1603_v34 = vmul.f32 %v3095_v31, %v1392_v57 }
 0x16f   : > { %v1425_v36 = vadd.f32 %v1409_v9, %v1359_v32  ;;  %v1536_v41 = vsel %vm779_vm4, %v1534_v27, %v1535_v11  ;;  %v1604_v37 = vmul.f32 %v3095_v31, %v1393_v26  ;;  %v1679_v56 = vrot.slane %v1601_v33, 2 }
 0x170   : > { %v1426_v39 = vadd.f32 %v1410_v3, %v1360_v28  ;;  %v1539_v40 = vsel %vm779_vm4, %v1537_v20, %v1538_v30  ;;  %v1680_v17 = vrot.slane %v1602_v51, 2  ;;  %v1682_v15 = vrot.slane %v1603_v34, 2 }
 0x171   : > { %v1570_v25 = vadd.f32 %v1536_v41, %v1425_v36  ;;  %v1683_v22 = vrot.slane %v1604_v37, 2  ;;  %v1863_v42 = vmul.f32 %v3226_v5, %v1819_v49  ;;  %v1899_v14 = vunpack.c.l.bf16 %v384_v52 }
 0x172   : > { %v1571_v46 = vadd.f32 %v1539_v40, %v1426_v39  ;;  %v1681_v31 = vsel %vm925_vm5, %v1679_v56, %v1680_v17  ;;  %v1864_v53 = vmul.f32 %v3226_v5, %v1821_v19  ;;  %v1900_v16 = vunpack.c.h.bf16 %v384_v52  ;;  %v394_v56 = vld [vmem:[%s2464_s28 + $0x28] sm:$0xff]  }
 0x173   : > { %v1684_v29 = vsel %vm925_vm5, %v1682_v15, %v1683_v22  ;;  %v1715_v47 = vadd.f32 %v1681_v31, %v1570_v25  ;;  %v1883_v48 = vadd.f32 %v3235_v38, %v1863_v42  ;;  %v1908_v21 = vunpack.c.h.bf16 %v392_v61 }
 0x174   : > { %v1716_v54 = vadd.f32 %v1684_v29, %v1571_v46  ;;  %v1884_v55 = vadd.f32 %v3235_v38, %v1864_v53  ;;  %v1901_v23 = vunpack.c.l.bf16 %v386_v18  ;;  %v1902_v34 = vunpack.c.h.bf16 %v386_v18  ;;  %v388_v29 = vld [vmem:[%s2464_s28 + $0x10] sm:$0xff]  }
 0x175   : > { %v1735_v43 = vmul.f32 %v3123_v24, %v1715_v47  ;;  %v1915_v49 = vadd.f32 %v1899_v14, %v1883_v48  ;;  %v1909_v40 = vunpack.c.l.bf16 %v394_v56  ;;  %v1910_v46 = vunpack.c.h.bf16 %v394_v56 }
 0x176   : > { %v1736_v57 = vmul.f32 %v3123_v24, %v1716_v54  ;;  %v1916_v58 = vadd.f32 %v1900_v16, %v1884_v55  ;;  %v1903_v54 = vunpack.c.l.bf16 %v388_v29 }
 0x177   : > { %v1755_v59 = vadd.f32 %v3134_v35, %v1735_v43  ;;  %v1931_v62 = vmax.f32 %v1915_v49, 0.0 }
 0x178   : > { %v1756_v7 = vadd.f32 %v3134_v35, %v1736_v57  ;;  %v1932_v60 = vmax.f32 %v1916_v58, 0.0  ;;  %v1907_v35 = vunpack.c.l.bf16 %v392_v61 }
 0x179   : > { %v1947_v44 = vpack.c.bf16 %v1931_v62, %v1931_v62  ;;  %v1771_v63 = vmax.f32 %v1755_v59, 0.0 }
 0x17a   : > { %v1772_v0 = vmax.f32 %v1756_v7, 0.0  ;;  %v1948_v1 = vpack.c.bf16 %v1932_v60, %v1932_v60  ;;  %v1839_v2 = vpop.f32.mrf.mxu3  ;;  %v1904_v7 = vunpack.c.h.bf16 %v388_v29 }
 0x17b   : > { %1964 = vst.msk [vmem:[%s3251_s24] sm:$0xf] %vm1963_vm7, %v1947_v44  ;;  %v1871_v24 = vmul.f32 %v3226_v5, %v1839_v2 }
 0x17c   : > { %v1780_v26 = vpack.c.bf16 %v1772_v0, %v1771_v63  ;;  %1965 = vst.msk [vmem:[%s3251_s24 + $0x4] sm:$0xf] %vm1963_vm7, %v1948_v1  ;;  %v396_v0 = vld [vmem:[%s2464_s28 + $0x30] sm:$0xff]  }
 0x17d   : > { %v1891_v9 = vadd.f32 %v3235_v38, %v1871_v24  ;;  %v1911_v24 = vunpack.c.l.bf16 %v396_v0 }
 0x17e   : > { %2131 = vmatmul.msk.bf16.gmra.mxu3 %vm578_vm1, %v1780_v26 }
 0x17f   : > { %v1923_v3 = vadd.f32 %v1907_v35, %v1891_v9 }
 0x181   : > { %v1939_v4 = vmax.f32 %v1923_v3, 0.0 }
 0x182   : > { %v1841_v6 = vpop.f32.mrf.mxu3 }
 0x183   : > { %v1955_v8 = vpack.c.bf16 %v1939_v4, %v1939_v4  ;;  %v1872_v10 = vmul.f32 %v3226_v5, %v1841_v6 }
 0x185   : > { %1972 = vst.msk [vmem:[%s3251_s24 + $0x20] sm:$0xf] %vm1963_vm7, %v1955_v8  ;;  %v1892_v12 = vadd.f32 %v3235_v38, %v1872_v10  ;;  %v1912_v8 = vunpack.c.h.bf16 %v396_v0 }
 0x187   : > { %v1924_v50 = vadd.f32 %v1908_v21, %v1892_v12  ;;  %v390_v12 = vld [vmem:[%s2464_s28 + $0x18] sm:$0xff]  }
 0x189   : > { %v1940_v13 = vmax.f32 %v1924_v50, 0.0 }
 0x18b   : > { %v1956_v45 = vpack.c.bf16 %v1940_v13, %v1940_v13 }
 0x18c   : > { %v1824_v33 = vpop.f32.mrf.mxu1 }
 0x18d   : > { %v1865_v51 = vmul.f32 %v3226_v5, %v1824_v33  ;;  %1973 = vst.msk [vmem:[%s3251_s24 + $0x24] sm:$0xf] %vm1963_vm7, %v1956_v45  ;;  %v1905_v33 = vunpack.c.l.bf16 %v390_v12 }
 0x18f   : > { %v1885_v32 = vadd.f32 %v3235_v38, %v1865_v51 }
 0x191   : > { %v1917_v27 = vadd.f32 %v1901_v23, %v1885_v32 }
 0x193   : > { %v1933_v11 = vmax.f32 %v1917_v27, 0.0 }
 0x194   : > { %v1826_v28 = vpop.f32.mrf.mxu1 }
 0x195   : > { %v1949_v20 = vpack.c.bf16 %v1933_v11, %v1933_v11  ;;  %v1866_v30 = vmul.f32 %v3226_v5, %v1826_v28 }
 0x197   : > { %1966 = vst.msk [vmem:[%s3251_s24 + $0x8] sm:$0xf] %vm1963_vm7, %v1949_v20  ;;  %v1886_v52 = vadd.f32 %v3235_v38, %v1866_v30  ;;  %v1906_v20 = vunpack.c.h.bf16 %v390_v12 }
 0x199   : > { %v1918_v36 = vadd.f32 %v1902_v34, %v1886_v52 }
 0x19b   : > { %v1934_v41 = vmax.f32 %v1918_v36, 0.0 }
 0x19d   : > { %v1950_v37 = vpack.c.bf16 %v1934_v41, %v1934_v41  ;;  %v398_v41 = vld [vmem:[%s2464_s28 + $0x38] sm:$0xff]   ;;  %s1993_s28 = scalar_lea.hbm %s3364_s10, %s2150_s19 }
 0x19e   : > { %s1996_s23 = sshll.u32 %s1993_s28, 4  ;;  %s1997_s23 = int_to_ptr.hbm [resolvable:$true] %s1996_s23 }
 0x19f   : > { %1967 = vst.msk [vmem:[%s3251_s24 + $0xc] sm:$0xf] %vm1963_vm7, %v1950_v37  ;;  %s2258_s30 = sshra.s32 %s1997_s23, 4  ;;  %s2259_s30 = int_to_ptr.hbm [resolvable:$true] %s2258_s30 }
 0x1a0   : > { %s2260_s11 = scalar_lea.hbm %s2259_s30, 64  ;;  %p2265_p0 = scmp.lt.s32.totalorder %s2259_s30, %s3364_s10 }
 0x1a1   : > { %p2261_p6 = scmp.ne.s32.totalorder %s2259_s30, %s2260_s11  ;;  %p2266_p1 = scmp.lt.s32.totalorder %s2264_s26, %s2260_s11 }
 0x1a3   : > { %p2262_p9 = pnand %p2261_p6, %p2422_p11  ;;  %p2267_p3 = por %p2266_p1, %p2265_p0 }
 0x1a5   : > { %p2263_p13 = pneg %p2262_p9 }
 0x1a7   : > { %p2268_p4 = pnand %p2267_p3, %p2263_p13 }
 0x1a8   : > { %v1844_v19 = vpop.f32.mrf.mxu3 }
 0x1a9   : > { %v1873_v39 = vmul.f32 %v3226_v5, %v1844_v19  ;;  %v1913_v19 = vunpack.c.l.bf16 %v398_v41 }
 0x1ab   : > { %v1893_v17 = vadd.f32 %v3235_v38, %v1873_v39 }
 0x1ad   : > { %v1925_v15 = vadd.f32 %v1909_v40, %v1893_v17 }
 0x1af   : > { %v1941_v25 = vmax.f32 %v1925_v15, 0.0 }
 0x1b0   : > { %v1846_v22 = vpop.f32.mrf.mxu3 }
 0x1b1   : > { %v1957_v42 = vpack.c.bf16 %v1941_v25, %v1941_v25  ;;  %v1874_v14 = vmul.f32 %v3226_v5, %v1846_v22 }
 0x1b3   : > { %1974 = vst.msk [vmem:[%s3251_s24 + $0x28] sm:$0xf] %vm1963_vm7, %v1957_v42  ;;  %v1894_v31 = vadd.f32 %v3235_v38, %v1874_v14  ;;  %v1914_v42 = vunpack.c.h.bf16 %v398_v41 }
 0x1b5   : > { %v1926_v53 = vadd.f32 %v1910_v46, %v1894_v31 }
 0x1b7   : > { %v1942_v47 = vmax.f32 %v1926_v53, 0.0 }
 0x1b8   : > { %v1829_v48 = vpop.f32.mrf.mxu1 }
 0x1b9   : > { %v1867_v16 = vmul.f32 %v3226_v5, %v1829_v48  ;;  %v1958_v55 = vpack.c.bf16 %v1942_v47, %v1942_v47 }
 0x1bb   : > { %v1887_v43 = vadd.f32 %v3235_v38, %v1867_v16  ;;  %1975 = vst.msk [vmem:[%s3251_s24 + $0x2c] sm:$0xf] %vm1963_vm7, %v1958_v55 }
 0x1bd   : > { %v1919_v49 = vadd.f32 %v1903_v54, %v1887_v43 }
 0x1bf   : > { %v1935_v57 = vmax.f32 %v1919_v49, 0.0 }
 0x1c0   : > { %v1831_v58 = vpop.f32.mrf.mxu1 }
 0x1c1   : > { %v1951_v59 = vpack.c.bf16 %v1935_v57, %v1935_v57  ;;  %v1868_v62 = vmul.f32 %v3226_v5, %v1831_v58 }
 0x1c3   : > { %1968 = vst.msk [vmem:[%s3251_s24 + $0x10] sm:$0xf] %vm1963_vm7, %v1951_v59  ;;  %v1888_v60 = vadd.f32 %v3235_v38, %v1868_v62 }
 0x1c5   : > { %v1920_v61 = vadd.f32 %v1904_v7, %v1888_v60 }
 0x1c7   : > { %v1936_v44 = vmax.f32 %v1920_v61, 0.0 }
 0x1c9   : > { %v1952_v63 = vpack.c.bf16 %v1936_v44, %v1936_v44 }
 0x1cb   : > { %1969 = vst.msk [vmem:[%s3251_s24 + $0x14] sm:$0xf] %vm1963_vm7, %v1952_v63 }
 0x1d4   : > { %v1849_v1 = vpop.f32.mrf.mxu3 }
 0x1d5   : > { %v1875_v2 = vmul.f32 %v3226_v5, %v1849_v1 }
 0x1d7   : > { %v1895_v35 = vadd.f32 %v3235_v38, %v1875_v2 }
 0x1d9   : > { %v1927_v26 = vadd.f32 %v1911_v24, %v1895_v35 }
 0x1db   : > { %v1943_v9 = vmax.f32 %v1927_v26, 0.0 }
 0x1dc   : > { %v1851_v3 = vpop.f32.mrf.mxu3 }
 0x1dd   : > { %v1959_v4 = vpack.c.bf16 %v1943_v9, %v1943_v9  ;;  %v1876_v6 = vmul.f32 %v3226_v5, %v1851_v3 }
 0x1df   : > { %1976 = vst.msk [vmem:[%s3251_s24 + $0x30] sm:$0xf] %vm1963_vm7, %v1959_v4  ;;  %v1896_v10 = vadd.f32 %v3235_v38, %v1876_v6 }
 0x1e1   : > { %v1928_v21 = vadd.f32 %v1912_v8, %v1896_v10 }
 0x1e3   : > { %v1944_v50 = vmax.f32 %v1928_v21, 0.0 }
 0x1e5   : > { %v1834_v13 = vpop.f32.mrf.mxu1  ;;  %v1960_v18 = vpack.c.bf16 %v1944_v50, %v1944_v50 }
 0x1e6   : > { %v1869_v45 = vmul.f32 %v3226_v5, %v1834_v13 }
 0x1e7   : > { %1977 = vst.msk [vmem:[%s3251_s24 + $0x34] sm:$0xf] %vm1963_vm7, %v1960_v18 }
 0x1e8   : > { %v1889_v51 = vadd.f32 %v3235_v38, %v1869_v45 }
 0x1ea   : > { %v1921_v23 = vadd.f32 %v1905_v33, %v1889_v51 }
 0x1ec   : > { %v1937_v32 = vmax.f32 %v1921_v23, 0.0 }
 0x1ed   : > { %v1836_v27 = vpop.f32.mrf.mxu1 }
 0x1ee   : > { %v1953_v11 = vpack.c.bf16 %v1937_v32, %v1937_v32  ;;  %v1870_v28 = vmul.f32 %v3226_v5, %v1836_v27 }
 0x1f0   : > { %1970 = vst.msk [vmem:[%s3251_s24 + $0x18] sm:$0xf] %vm1963_vm7, %v1953_v11  ;;  %v1890_v30 = vadd.f32 %v3235_v38, %v1870_v28 }
 0x1f2   : > { %v1922_v34 = vadd.f32 %v1906_v20, %v1890_v30 }
 0x1f4   : > { %v1938_v52 = vmax.f32 %v1922_v34, 0.0 }
 0x1f6   : > { %v1954_v36 = vpack.c.bf16 %v1938_v52, %v1938_v52 }
 0x1f8   : > { %1971 = vst.msk [vmem:[%s3251_s24 + $0x1c] sm:$0xf] %vm1963_vm7, %v1954_v36 }
 0x201   : > { %v1854_v37 = vpop.f32.mrf.mxu3 }
 0x202   : > { %v1877_v56 = vmul.f32 %v3226_v5, %v1854_v37 }
 0x204   : > { %v1897_v39 = vadd.f32 %v3235_v38, %v1877_v56 }
 0x206   : > { %v1929_v40 = vadd.f32 %v1913_v19, %v1897_v39 }
 0x208   : > { %v1945_v17 = vmax.f32 %v1929_v40, 0.0 }
 0x209   : > { %v1856_v15 = vpop.f32.mrf.mxu3 }
 0x20a   : > { %v1961_v25 = vpack.c.bf16 %v1945_v17, %v1945_v17  ;;  %v1878_v22 = vmul.f32 %v3226_v5, %v1856_v15 }
 0x20c   : > { %1978 = vst.msk [vmem:[%s3251_s24 + $0x38] sm:$0xf] %vm1963_vm7, %v1961_v25  ;;  %v1898_v14 = vadd.f32 %v3235_v38, %v1878_v22 }
 0x20e   : > { %v1930_v46 = vadd.f32 %v1914_v42, %v1898_v14 }
 0x210   : > { %v1946_v31 = vmax.f32 %v1930_v46, 0.0 }
 0x212   : > { %v1962_v53 = vpack.c.bf16 %v1946_v31, %v1946_v31 }
 0x214   : > { %1979 = vst.msk [vmem:[%s3251_s24 + $0x3c] sm:$0xf] %vm1963_vm7, %v1962_v53 }
 0x215   : > { %2271 = shalt.err (!%p2268_p4)
}
 0x216   : > { %s2315_s18 = smov 64   ;;  %s2316_s24 = smov 4  }
 0x217   : > { %2155 = dma.vmem_to_hbm [thread:$0]  (%p2422_p11), %s1995_s29, 1024, %s1997_s23, %s1981_s17, %s2315_s18, %s2315_s18, %s2316_s24  }
 0x218 PF: > { %s2011_s20 = sand.u32 1, %s2298_s13   ;;  %p3379_p7 = scmp.ge.s32.totalorder %s2310_s16, 2 }
 0x219   : > { %s2012_s21 = scalar_lea.sflag [#allocation5], %s2011_s20 }
 0x21a   : > { %p2162_p5 = pnand %p3379_p7, %p2426_p12 }
 0x21c   : > { %p2163_p8 = pneg %p2162_p5 }
 0x21e   : > { %2293 = dma.done.wait (%p2163_p8), %s2012_s21, 1024  }
 0x21f   : > { %2295 = vsyncadd (%p2163_p8), %s2012_s21, 4294966272  ;;  %s3380_s16 = sld [smem:[#allocation10_spill]]  ;;  %s3383_s13 = smov %s2302_s14 }
 0x220   : > { %s3381_s28 = sld [smem:[#allocation9_spill]] }
 0x221   : > { %s3382_s15 = sld [smem:[#allocation11_spill]] }
 0x225   : > { %p23_p10 = scmp.ge.s32.totalorder %s3380_s16, 4  }
 0x226   : > { %s3384_s14 = smov %s3381_s28 }
 0x227   :  { %25 = sbr.rel (!%p23_p10) target bundleno = 5 (0x5), region = 108 }
 0x22c   :  { %2018 = vsyncpa [#allocation4], 1 }
 0x22d   :  { %2020 = vsyncpa [#allocation4 + $0x1], 1 }
 0x22e   :  { %2021 = vsyncpa [#allocation5], 1 }
 0x22f   :  { %2023 = vsyncpa [#allocation5 + $0x1], 1 }

</bundles_post_ra>
